<compile_context>
chip_gen: v6e
topology: v6e:2x2x1
jax: 0.10.0
libtpu: 0.0.40
codegen_flags: <defaults>
</compile_context>

<pallas_src>
import jax
import jax.numpy as jnp
from jax.experimental import pallas as pl
from jax.experimental.pallas import tpu as pltpu

UNI_NUM = 32


# ----------------------------------------------------------------------------
# Fused Pallas kernel (single pallas_call, no grid, no scratch)
# ----------------------------------------------------------------------------
def fused_lstm_kernel(x_ref, wih0_ref, wrec_ref, b0_ref, b1_ref,
                      h00_ref, c00_ref, h01_ref, c01_ref,
                      wlin_ref, blin_ref, out_ref):
    """Wavefronted 2-layer LSTM + linear head + log-softmax in one kernel.

    x_ref    : (T*B, D)  bf16, time-major rows (row = t*B + b), layer-0 input
    wih0_ref : (D, 4H)   bf16, layer-0 input->gate weights (i/f/o cols * 0.5)
    wrec_ref : (2H, 8H)  bf16, fused recurrent block weight:
                           [[Whh0 , Wih1],
                            [  0  , Whh1]]          (i/f/o cols * 0.5)
    b0_ref   : (1, 4H)   f32, layer-0 combined bias (i/f/o * 0.5)
    b1_ref   : (1, 4H)   f32, layer-1 combined bias (i/f/o * 0.5)
    h00/c00  : (B, H)    f32, layer-0 initial hidden / cell state
    h01/c01  : (B, H)    f32, layer-1 initial hidden / cell state
    wlin_ref : (H, U)    bf16 head weight; blin_ref: (1, U) f32 head bias
    out_ref  : (T*B, U)  f32 log-probabilities (time-major rows)
    Gate order matches PyTorch: i, f, g, o.
    """
    B, H = h00_ref.shape
    G = 4 * H
    T = x_ref.shape[0] // B

    # ---- hoisted, recurrence-independent work -------------------------------
    # Layer-0 input projection for all time steps at once: (T*B, D) @ (D, 4H).
    pg0 = (jnp.dot(x_ref[...], wih0_ref[...], preferred_element_type=jnp.float32)
           + b0_ref[...])                                      # (T*B, 4H) f32
    wrec = wrec_ref[...]                                       # (2H, 8H) bf16
    b1 = b1_ref[...]                                           # (1, 4H)  f32

    def gates_to_c(t4, c_prev):
        # t4 = tanh(pre-gates); i/f/o columns were pre-scaled by 0.5 so that
        # sigmoid(z) = 0.5*tanh(z/2) + 0.5; g = tanh(z) directly.
        i_g = 0.5 * t4[:, 0 * H:1 * H] + 0.5
        f_g = 0.5 * t4[:, 1 * H:2 * H] + 0.5
        g_g = t4[:, 2 * H:3 * H]
        o_g = 0.5 * t4[:, 3 * H:4 * H] + 0.5
        return f_g * c_prev + i_g * g_g, o_g

    def fused_rec(h0, h1):
        # One block-structured matmul for both layers' recurrent contributions.
        lhs = jnp.concatenate([h0, h1], axis=1).astype(jnp.bfloat16)    # (B, 2H)
        return jnp.dot(lhs, wrec, preferred_element_type=jnp.float32)   # (B, 8H)

    h0, c0 = h00_ref[...], c00_ref[...]
    h1, c1 = h01_ref[...], c01_ref[...]
    ys = []                                    # layer-1 hidden states, time order

    # ---- wavefront step s = 0: layer-0 @ t=0 only ----------------------------
    rec = fused_rec(h0, h1)
    th0 = jnp.tanh(rec[:, :G] + pg0[0:B, :])
    c0, o0 = gates_to_c(th0, c0)
    h0 = o0 * jnp.tanh(c0)

    # ---- wavefront steps s = 1..T-1: layer-0 @ t=s and layer-1 @ t=s-1 -------
    for s in range(1, T):                      # static T -> fully unrolled
        rec = fused_rec(h0, h1)                # uses h0[s-1], h1[s-2]
        pre0 = rec[:, :G] + pg0[s * B:(s + 1) * B, :]
        pre1 = rec[:, G:] + b1
        th = jnp.tanh(jnp.concatenate([pre0, pre1], axis=1))   # one EUP pass
        c0, o0 = gates_to_c(th[:, :G], c0)
        c1, o1 = gates_to_c(th[:, G:], c1)
        tc = jnp.tanh(jnp.concatenate([c0, c1], axis=1))       # one EUP pass
        h0 = o0 * tc[:, :H]
        h1 = o1 * tc[:, H:]
        ys.append(h1)                          # layer-1 output @ t = s-1

    # ---- wavefront step s = T: layer-1 @ t=T-1 only --------------------------
    rec = fused_rec(h0, h1)
    th1 = jnp.tanh(rec[:, G:] + b1)
    c1, o1 = gates_to_c(th1, c1)
    h1 = o1 * jnp.tanh(c1)
    ys.append(h1)

    # Inter-layer / final dropout p=0.1 -> identity (eval mode).

    # ---- head: linear + log-softmax (one batched matmul, off the recurrence) -
    y1 = jnp.concatenate(ys, axis=0).astype(jnp.bfloat16)      # (T*B, H)
    logits = (jnp.dot(y1, wlin_ref[...], preferred_element_type=jnp.float32)
              + blin_ref[...])                                 # (T*B, U) f32
    m = jnp.max(logits, axis=-1, keepdims=True)
    z = logits - m
    lse = jnp.log(jnp.sum(jnp.exp(z), axis=-1, keepdims=True))
    out_ref[...] = z - lse


# ----------------------------------------------------------------------------
# Wrapper
# ----------------------------------------------------------------------------
_VMEM_SPEC = pl.BlockSpec(memory_space=pltpu.MemorySpace.VMEM)


def lstm_forward(x, c, h, params):
    """Matches LSTM.forward(x, c, h): x (B, T, D); c, h (num_layers=2, B, H).

    Returns log_softmax(linear(lstm(x)), axis=-1) with shape (B, T, UNI_NUM).
    """
    B, T, D = x.shape
    H = params["w_hh_l0"].shape[1]
    U = params["w_lin"].shape[0]
    G = 4 * H

    # Fold sigmoid(z) = 0.5*tanh(z/2) + 0.5 into the parameters: scale the
    # i/f/o gate columns (PyTorch order i,f,g,o) of every gate weight and bias
    # by 0.5 so the kernel needs a single tanh per gate row.  Exact in bf16.
    s4 = jnp.concatenate([jnp.full((H,), 0.5, jnp.float32),
                          jnp.full((H,), 0.5, jnp.float32),
                          jnp.ones((H,), jnp.float32),
                          jnp.full((H,), 0.5, jnp.float32)])

    def prep_w(w):  # (4H, K) -> (K, 4H), gate-scaled, bf16 (f32 acc in-kernel)
        return (jnp.transpose(w) * s4).astype(jnp.bfloat16)

    wih0 = prep_w(params["w_ih_l0"])                     # (D, 4H)
    whh0 = prep_w(params["w_hh_l0"])                     # (H, 4H)
    wih1 = prep_w(params["w_ih_l1"])                     # (H, 4H)
    whh1 = prep_w(params["w_hh_l1"])                     # (H, 4H)
    b0 = ((params["b_ih_l0"] + params["b_hh_l0"]) * s4).reshape(1, G).astype(jnp.float32)
    b1 = ((params["b_ih_l1"] + params["b_hh_l1"]) * s4).reshape(1, G).astype(jnp.float32)

    # Fused block recurrent weight for the wavefront matmul:
    #   [h0_prev | h1_prev] @ [[Whh0, Wih1], [0, Whh1]] -> [l0 gates | l1 gates]
    wrec = jnp.concatenate([
        jnp.concatenate([whh0, wih1], axis=1),
        jnp.concatenate([jnp.zeros((H, G), jnp.bfloat16), whh1], axis=1),
    ], axis=0)                                           # (2H, 8H)

    wlin = jnp.transpose(params["w_lin"]).astype(jnp.bfloat16)   # (H, U)
    blin = params["b_lin"].reshape(1, U).astype(jnp.float32)

    # Time-major 2-D activations at the kernel boundary (tiny XLA ops here;
    # only contiguous static slices inside the kernel).
    x2d = jnp.transpose(x, (1, 0, 2)).reshape(T * B, D).astype(jnp.bfloat16)

    out2d = pl.pallas_call(
        fused_lstm_kernel,
        out_shape=jax.ShapeDtypeStruct((T * B, U), jnp.float32),
        in_specs=[_VMEM_SPEC] * 11,
        out_specs=_VMEM_SPEC,
    )(x2d, wih0, wrec, b0, b1,
      h[0].astype(jnp.float32), c[0].astype(jnp.float32),
      h[1].astype(jnp.float32), c[1].astype(jnp.float32),
      wlin, blin)

    return jnp.transpose(out2d.reshape(T, B, U), (1, 0, 2))      # (B, T, U)


# ----------------------------------------------------------------------------
# Pure-JAX (XLA) f32 reference for numerical validation (eval-mode module)
# ----------------------------------------------------------------------------
def lstm_reference(x, c, h, params):
    def layer(xs, h0, c0, w_ih, w_hh, b_ih, b_hh):
        H = h0.shape[-1]

        def step(carry, x_t):
            h_prev, c_prev = carry
            z = x_t @ w_ih.T + b_ih + h_prev @ w_hh.T + b_hh
            i = jax.nn.sigmoid(z[:, 0 * H:1 * H])
            f = jax.nn.sigmoid(z[:, 1 * H:2 * H])
            g = jnp.tanh(z[:, 2 * H:3 * H])
            o = jax.nn.sigmoid(z[:, 3 * H:4 * H])
            c_new = f * c_prev + i * g
            h_new = o * jnp.tanh(c_new)
            return (h_new, c_new), h_new

        _, ys = jax.lax.scan(step, (h0, c0), jnp.swapaxes(xs, 0, 1))
        return jnp.swapaxes(ys, 0, 1)

    y0 = layer(x, h[0], c[0], params["w_ih_l0"], params["w_hh_l0"],
               params["b_ih_l0"], params["b_hh_l0"])
    y1 = layer(y0, h[1], c[1], params["w_ih_l1"], params["w_hh_l1"],
               params["b_ih_l1"], params["b_hh_l1"])
    logits = y1 @ params["w_lin"].T + params["b_lin"]
    return jax.nn.log_softmax(logits, axis=-1)


# ----------------------------------------------------------------------------
# Deterministic parameter init (shapes follow nn.LSTM / nn.Linear)
# ----------------------------------------------------------------------------
def init_params(key, in_dim, hidden):
    ks = jax.random.split(key, 12)
    bound = 1.0 / jnp.sqrt(hidden)

    def u(k, shape):
        return jax.random.uniform(k, shape, jnp.float32, -bound, bound)

    return {
        # layer 0
        "w_ih_l0": u(ks[0], (4 * hidden, in_dim)),
        "w_hh_l0": u(ks[1], (4 * hidden, hidden)),
        "b_ih_l0": u(ks[2], (4 * hidden,)),
        "b_hh_l0": u(ks[3], (4 * hidden,)),
        # layer 1 (input is hidden of layer 0)
        "w_ih_l1": u(ks[4], (4 * hidden, hidden)),
        "w_hh_l1": u(ks[5], (4 * hidden, hidden)),
        "b_ih_l1": u(ks[6], (4 * hidden,)),
        "b_hh_l1": u(ks[7], (4 * hidden,)),
        # linear head (externally supplied Parameter in the reference module)
        "w_lin": u(ks[8], (UNI_NUM, hidden)),
        "b_lin": u(ks[9], (UNI_NUM,)),
    }


if __name__ == "__main__":
    B, T, IN_DIM, HIDDEN = 2, 8, 16, 32

    key = jax.random.PRNGKey(0)
    k_x, k_h, k_c, k_p = jax.random.split(key, 4)

    x = jax.random.normal(k_x, (B, T, IN_DIM), jnp.float32)
    h0 = jax.random.normal(k_h, (2, B, HIDDEN), jnp.float32)
    c0 = jax.random.normal(k_c, (2, B, HIDDEN), jnp.float32)
    params = init_params(k_p, IN_DIM, HIDDEN)

    out = jax.jit(lstm_forward)(x, c0, h0, params)
    out = jax.block_until_ready(out)

    assert out.shape == (B, T, UNI_NUM)
    # log-softmax rows must sum to ~1 in prob space
    assert jnp.allclose(jnp.sum(jnp.exp(out), axis=-1), 1.0, atol=1e-4)
    assert bool(jnp.all(jnp.isfinite(out)))

    # numerical check vs. f32 XLA reference (bf16 MXU operands -> loose tol)
    ref = lstm_reference(x, c0, h0, params)
    assert float(jnp.max(jnp.abs(out - ref))) < 7e-2

    print("KERNEL_OK")
</pallas_src>

<mosaic_0001>
module attributes {stable_mosaic.version = 11 : i64} {
  func.func @fused_lstm_kernel(%arg0: memref<16x16xbf16, #tpu.memory_space<vmem>>, %arg1: memref<16x128xbf16, #tpu.memory_space<vmem>>, %arg2: memref<64x256xbf16, #tpu.memory_space<vmem>>, %arg3: memref<1x128xf32, #tpu.memory_space<vmem>>, %arg4: memref<1x128xf32, #tpu.memory_space<vmem>>, %arg5: memref<2x32xf32, #tpu.memory_space<vmem>>, %arg6: memref<2x32xf32, #tpu.memory_space<vmem>>, %arg7: memref<2x32xf32, #tpu.memory_space<vmem>>, %arg8: memref<2x32xf32, #tpu.memory_space<vmem>>, %arg9: memref<32x32xbf16, #tpu.memory_space<vmem>>, %arg10: memref<1x32xf32, #tpu.memory_space<vmem>>, %arg11: memref<16x32xf32, #tpu.memory_space<vmem>>) attributes {dimension_semantics = [], scalar_prefetch = 0 : i64, scratch_operands = 0 : i64, tpu.core_type = #tpu.core_type<tc>} {
    %c0 = arith.constant 0 : index
    %c0_0 = arith.constant 0 : index
    %0 = vector.load %arg0[%c0, %c0_0] : memref<16x16xbf16, #tpu.memory_space<vmem>>, vector<16x16xbf16>
    %c0_1 = arith.constant 0 : index
    %c0_2 = arith.constant 0 : index
    %1 = vector.load %arg1[%c0_1, %c0_2] : memref<16x128xbf16, #tpu.memory_space<vmem>>, vector<16x128xbf16>
    %cst = arith.constant dense<0.000000e+00> : vector<16x128xf32>
    %2 = tpu.matmul %0, %1, %cst {dimension_numbers = #tpu.dot_dimension_numbers<[1], [0], [0], [1], [0, 0, 1, 1], [], []>} : vector<16x16xbf16>, vector<16x128xbf16>, vector<16x128xf32> -> vector<16x128xf32>
    %c0_3 = arith.constant 0 : index
    %c0_4 = arith.constant 0 : index
    %3 = vector.load %arg3[%c0_3, %c0_4] : memref<1x128xf32, #tpu.memory_space<vmem>>, vector<1x128xf32>
    %4 = vector.broadcast %3 : vector<1x128xf32> to vector<16x128xf32>
    %5 = arith.addf %2, %4 : vector<16x128xf32>
    %c0_5 = arith.constant 0 : index
    %c0_6 = arith.constant 0 : index
    %6 = vector.load %arg2[%c0_5, %c0_6] : memref<64x256xbf16, #tpu.memory_space<vmem>>, vector<64x256xbf16>
    %c0_7 = arith.constant 0 : index
    %c0_8 = arith.constant 0 : index
    %7 = vector.load %arg4[%c0_7, %c0_8] : memref<1x128xf32, #tpu.memory_space<vmem>>, vector<1x128xf32>
    %c0_9 = arith.constant 0 : index
    %c0_10 = arith.constant 0 : index
    %8 = vector.load %arg5[%c0_9, %c0_10] : memref<2x32xf32, #tpu.memory_space<vmem>>, vector<2x32xf32>
    %c0_11 = arith.constant 0 : index
    %c0_12 = arith.constant 0 : index
    %9 = vector.load %arg6[%c0_11, %c0_12] : memref<2x32xf32, #tpu.memory_space<vmem>>, vector<2x32xf32>
    %c0_13 = arith.constant 0 : index
    %c0_14 = arith.constant 0 : index
    %10 = vector.load %arg7[%c0_13, %c0_14] : memref<2x32xf32, #tpu.memory_space<vmem>>, vector<2x32xf32>
    %c0_15 = arith.constant 0 : index
    %c0_16 = arith.constant 0 : index
    %11 = vector.load %arg8[%c0_15, %c0_16] : memref<2x32xf32, #tpu.memory_space<vmem>>, vector<2x32xf32>
    %12 = tpu.concatenate %8, %10 in 1 : vector<2x32xf32>, vector<2x32xf32> -> vector<2x64xf32>
    %13 = arith.truncf %12 : vector<2x64xf32> to vector<2x64xbf16>
    %cst_17 = arith.constant dense<0.000000e+00> : vector<2x256xf32>
    %14 = tpu.matmul %13, %6, %cst_17 {dimension_numbers = #tpu.dot_dimension_numbers<[1], [0], [0], [1], [0, 0, 1, 1], [], []>} : vector<2x64xbf16>, vector<64x256xbf16>, vector<2x256xf32> -> vector<2x256xf32>
    %15 = vector.extract_strided_slice %14 {offsets = [0, 0], sizes = [2, 128], strides = [1, 1]} : vector<2x256xf32> to vector<2x128xf32>
    %16 = vector.extract_strided_slice %5 {offsets = [0, 0], sizes = [2, 128], strides = [1, 1]} : vector<16x128xf32> to vector<2x128xf32>
    %17 = arith.addf %15, %16 : vector<2x128xf32>
    %18 = math.tanh %17 : vector<2x128xf32>
    %19 = vector.extract_strided_slice %18 {offsets = [0, 0], sizes = [2, 32], strides = [1, 1]} : vector<2x128xf32> to vector<2x32xf32>
    %cst_18 = arith.constant 5.000000e-01 : f32
    %20 = vector.broadcast %cst_18 : f32 to vector<2x32xf32>
    %21 = arith.mulf %20, %19 : vector<2x32xf32>
    %cst_19 = arith.constant 5.000000e-01 : f32
    %22 = vector.broadcast %cst_19 : f32 to vector<2x32xf32>
    %23 = arith.addf %21, %22 : vector<2x32xf32>
    %24 = vector.extract_strided_slice %18 {offsets = [0, 32], sizes = [2, 32], strides = [1, 1]} : vector<2x128xf32> to vector<2x32xf32>
    %cst_20 = arith.constant 5.000000e-01 : f32
    %25 = vector.broadcast %cst_20 : f32 to vector<2x32xf32>
    %26 = arith.mulf %25, %24 : vector<2x32xf32>
    %cst_21 = arith.constant 5.000000e-01 : f32
    %27 = vector.broadcast %cst_21 : f32 to vector<2x32xf32>
    %28 = arith.addf %26, %27 : vector<2x32xf32>
    %29 = vector.extract_strided_slice %18 {offsets = [0, 64], sizes = [2, 32], strides = [1, 1]} : vector<2x128xf32> to vector<2x32xf32>
    %30 = vector.extract_strided_slice %18 {offsets = [0, 96], sizes = [2, 32], strides = [1, 1]} : vector<2x128xf32> to vector<2x32xf32>
    %cst_22 = arith.constant 5.000000e-01 : f32
    %31 = vector.broadcast %cst_22 : f32 to vector<2x32xf32>
    %32 = arith.mulf %31, %30 : vector<2x32xf32>
    %cst_23 = arith.constant 5.000000e-01 : f32
    %33 = vector.broadcast %cst_23 : f32 to vector<2x32xf32>
    %34 = arith.addf %32, %33 : vector<2x32xf32>
    %35 = arith.mulf %28, %9 : vector<2x32xf32>
    %36 = arith.mulf %23, %29 : vector<2x32xf32>
    %37 = arith.addf %35, %36 : vector<2x32xf32>
    %38 = math.tanh %37 : vector<2x32xf32>
    %39 = arith.mulf %34, %38 : vector<2x32xf32>
    %40 = tpu.concatenate %39, %10 in 1 : vector<2x32xf32>, vector<2x32xf32> -> vector<2x64xf32>
    %41 = arith.truncf %40 : vector<2x64xf32> to vector<2x64xbf16>
    %cst_24 = arith.constant dense<0.000000e+00> : vector<2x256xf32>
    %42 = tpu.matmul %41, %6, %cst_24 {dimension_numbers = #tpu.dot_dimension_numbers<[1], [0], [0], [1], [0, 0, 1, 1], [], []>} : vector<2x64xbf16>, vector<64x256xbf16>, vector<2x256xf32> -> vector<2x256xf32>
    %43 = vector.extract_strided_slice %42 {offsets = [0, 0], sizes = [2, 128], strides = [1, 1]} : vector<2x256xf32> to vector<2x128xf32>
    %44 = vector.extract_strided_slice %5 {offsets = [2, 0], sizes = [2, 128], strides = [1, 1]} : vector<16x128xf32> to vector<2x128xf32>
    %45 = arith.addf %43, %44 : vector<2x128xf32>
    %46 = vector.extract_strided_slice %42 {offsets = [0, 128], sizes = [2, 128], strides = [1, 1]} : vector<2x256xf32> to vector<2x128xf32>
    %47 = vector.broadcast %7 : vector<1x128xf32> to vector<2x128xf32>
    %48 = arith.addf %46, %47 : vector<2x128xf32>
    %49 = tpu.concatenate %45, %48 in 1 : vector<2x128xf32>, vector<2x128xf32> -> vector<2x256xf32>
    %50 = math.tanh %49 : vector<2x256xf32>
    %51 = vector.extract_strided_slice %50 {offsets = [0, 0], sizes = [2, 128], strides = [1, 1]} : vector<2x256xf32> to vector<2x128xf32>
    %52 = vector.extract_strided_slice %51 {offsets = [0, 0], sizes = [2, 32], strides = [1, 1]} : vector<2x128xf32> to vector<2x32xf32>
    %cst_25 = arith.constant 5.000000e-01 : f32
    %53 = vector.broadcast %cst_25 : f32 to vector<2x32xf32>
    %54 = arith.mulf %53, %52 : vector<2x32xf32>
    %cst_26 = arith.constant 5.000000e-01 : f32
    %55 = vector.broadcast %cst_26 : f32 to vector<2x32xf32>
    %56 = arith.addf %54, %55 : vector<2x32xf32>
    %57 = vector.extract_strided_slice %51 {offsets = [0, 32], sizes = [2, 32], strides = [1, 1]} : vector<2x128xf32> to vector<2x32xf32>
    %cst_27 = arith.constant 5.000000e-01 : f32
    %58 = vector.broadcast %cst_27 : f32 to vector<2x32xf32>
    %59 = arith.mulf %58, %57 : vector<2x32xf32>
    %cst_28 = arith.constant 5.000000e-01 : f32
    %60 = vector.broadcast %cst_28 : f32 to vector<2x32xf32>
    %61 = arith.addf %59, %60 : vector<2x32xf32>
    %62 = vector.extract_strided_slice %51 {offsets = [0, 64], sizes = [2, 32], strides = [1, 1]} : vector<2x128xf32> to vector<2x32xf32>
    %63 = vector.extract_strided_slice %51 {offsets = [0, 96], sizes = [2, 32], strides = [1, 1]} : vector<2x128xf32> to vector<2x32xf32>
    %cst_29 = arith.constant 5.000000e-01 : f32
    %64 = vector.broadcast %cst_29 : f32 to vector<2x32xf32>
    %65 = arith.mulf %64, %63 : vector<2x32xf32>
    %cst_30 = arith.constant 5.000000e-01 : f32
    %66 = vector.broadcast %cst_30 : f32 to vector<2x32xf32>
    %67 = arith.addf %65, %66 : vector<2x32xf32>
    %68 = arith.mulf %61, %37 : vector<2x32xf32>
    %69 = arith.mulf %56, %62 : vector<2x32xf32>
    %70 = arith.addf %68, %69 : vector<2x32xf32>
    %71 = vector.extract_strided_slice %50 {offsets = [0, 128], sizes = [2, 128], strides = [1, 1]} : vector<2x256xf32> to vector<2x128xf32>
    %72 = vector.extract_strided_slice %71 {offsets = [0, 0], sizes = [2, 32], strides = [1, 1]} : vector<2x128xf32> to vector<2x32xf32>
    %cst_31 = arith.constant 5.000000e-01 : f32
    %73 = vector.broadcast %cst_31 : f32 to vector<2x32xf32>
    %74 = arith.mulf %73, %72 : vector<2x32xf32>
    %cst_32 = arith.constant 5.000000e-01 : f32
    %75 = vector.broadcast %cst_32 : f32 to vector<2x32xf32>
    %76 = arith.addf %74, %75 : vector<2x32xf32>
    %77 = vector.extract_strided_slice %71 {offsets = [0, 32], sizes = [2, 32], strides = [1, 1]} : vector<2x128xf32> to vector<2x32xf32>
    %cst_33 = arith.constant 5.000000e-01 : f32
    %78 = vector.broadcast %cst_33 : f32 to vector<2x32xf32>
    %79 = arith.mulf %78, %77 : vector<2x32xf32>
    %cst_34 = arith.constant 5.000000e-01 : f32
    %80 = vector.broadcast %cst_34 : f32 to vector<2x32xf32>
    %81 = arith.addf %79, %80 : vector<2x32xf32>
    %82 = vector.extract_strided_slice %71 {offsets = [0, 64], sizes = [2, 32], strides = [1, 1]} : vector<2x128xf32> to vector<2x32xf32>
    %83 = vector.extract_strided_slice %71 {offsets = [0, 96], sizes = [2, 32], strides = [1, 1]} : vector<2x128xf32> to vector<2x32xf32>
    %cst_35 = arith.constant 5.000000e-01 : f32
    %84 = vector.broadcast %cst_35 : f32 to vector<2x32xf32>
    %85 = arith.mulf %84, %83 : vector<2x32xf32>
    %cst_36 = arith.constant 5.000000e-01 : f32
    %86 = vector.broadcast %cst_36 : f32 to vector<2x32xf32>
    %87 = arith.addf %85, %86 : vector<2x32xf32>
    %88 = arith.mulf %81, %11 : vector<2x32xf32>
    %89 = arith.mulf %76, %82 : vector<2x32xf32>
    %90 = arith.addf %88, %89 : vector<2x32xf32>
    %91 = tpu.concatenate %70, %90 in 1 : vector<2x32xf32>, vector<2x32xf32> -> vector<2x64xf32>
    %92 = math.tanh %91 : vector<2x64xf32>
    %93 = vector.extract_strided_slice %92 {offsets = [0, 0], sizes = [2, 32], strides = [1, 1]} : vector<2x64xf32> to vector<2x32xf32>
    %94 = arith.mulf %67, %93 : vector<2x32xf32>
    %95 = vector.extract_strided_slice %92 {offsets = [0, 32], sizes = [2, 32], strides = [1, 1]} : vector<2x64xf32> to vector<2x32xf32>
    %96 = arith.mulf %87, %95 : vector<2x32xf32>
    %97 = tpu.concatenate %94, %96 in 1 : vector<2x32xf32>, vector<2x32xf32> -> vector<2x64xf32>
    %98 = arith.truncf %97 : vector<2x64xf32> to vector<2x64xbf16>
    %cst_37 = arith.constant dense<0.000000e+00> : vector<2x256xf32>
    %99 = tpu.matmul %98, %6, %cst_37 {dimension_numbers = #tpu.dot_dimension_numbers<[1], [0], [0], [1], [0, 0, 1, 1], [], []>} : vector<2x64xbf16>, vector<64x256xbf16>, vector<2x256xf32> -> vector<2x256xf32>
    %100 = vector.extract_strided_slice %99 {offsets = [0, 0], sizes = [2, 128], strides = [1, 1]} : vector<2x256xf32> to vector<2x128xf32>
    %101 = vector.extract_strided_slice %5 {offsets = [4, 0], sizes = [2, 128], strides = [1, 1]} : vector<16x128xf32> to vector<2x128xf32>
    %102 = arith.addf %100, %101 : vector<2x128xf32>
    %103 = vector.extract_strided_slice %99 {offsets = [0, 128], sizes = [2, 128], strides = [1, 1]} : vector<2x256xf32> to vector<2x128xf32>
    %104 = vector.broadcast %7 : vector<1x128xf32> to vector<2x128xf32>
    %105 = arith.addf %103, %104 : vector<2x128xf32>
    %106 = tpu.concatenate %102, %105 in 1 : vector<2x128xf32>, vector<2x128xf32> -> vector<2x256xf32>
    %107 = math.tanh %106 : vector<2x256xf32>
    %108 = vector.extract_strided_slice %107 {offsets = [0, 0], sizes = [2, 128], strides = [1, 1]} : vector<2x256xf32> to vector<2x128xf32>
    %109 = vector.extract_strided_slice %108 {offsets = [0, 0], sizes = [2, 32], strides = [1, 1]} : vector<2x128xf32> to vector<2x32xf32>
    %cst_38 = arith.constant 5.000000e-01 : f32
    %110 = vector.broadcast %cst_38 : f32 to vector<2x32xf32>
    %111 = arith.mulf %110, %109 : vector<2x32xf32>
    %cst_39 = arith.constant 5.000000e-01 : f32
    %112 = vector.broadcast %cst_39 : f32 to vector<2x32xf32>
    %113 = arith.addf %111, %112 : vector<2x32xf32>
    %114 = vector.extract_strided_slice %108 {offsets = [0, 32], sizes = [2, 32], strides = [1, 1]} : vector<2x128xf32> to vector<2x32xf32>
    %cst_40 = arith.constant 5.000000e-01 : f32
    %115 = vector.broadcast %cst_40 : f32 to vector<2x32xf32>
    %116 = arith.mulf %115, %114 : vector<2x32xf32>
    %cst_41 = arith.constant 5.000000e-01 : f32
    %117 = vector.broadcast %cst_41 : f32 to vector<2x32xf32>
    %118 = arith.addf %116, %117 : vector<2x32xf32>
    %119 = vector.extract_strided_slice %108 {offsets = [0, 64], sizes = [2, 32], strides = [1, 1]} : vector<2x128xf32> to vector<2x32xf32>
    %120 = vector.extract_strided_slice %108 {offsets = [0, 96], sizes = [2, 32], strides = [1, 1]} : vector<2x128xf32> to vector<2x32xf32>
    %cst_42 = arith.constant 5.000000e-01 : f32
    %121 = vector.broadcast %cst_42 : f32 to vector<2x32xf32>
    %122 = arith.mulf %121, %120 : vector<2x32xf32>
    %cst_43 = arith.constant 5.000000e-01 : f32
    %123 = vector.broadcast %cst_43 : f32 to vector<2x32xf32>
    %124 = arith.addf %122, %123 : vector<2x32xf32>
    %125 = arith.mulf %118, %70 : vector<2x32xf32>
    %126 = arith.mulf %113, %119 : vector<2x32xf32>
    %127 = arith.addf %125, %126 : vector<2x32xf32>
    %128 = vector.extract_strided_slice %107 {offsets = [0, 128], sizes = [2, 128], strides = [1, 1]} : vector<2x256xf32> to vector<2x128xf32>
    %129 = vector.extract_strided_slice %128 {offsets = [0, 0], sizes = [2, 32], strides = [1, 1]} : vector<2x128xf32> to vector<2x32xf32>
    %cst_44 = arith.constant 5.000000e-01 : f32
    %130 = vector.broadcast %cst_44 : f32 to vector<2x32xf32>
    %131 = arith.mulf %130, %129 : vector<2x32xf32>
    %cst_45 = arith.constant 5.000000e-01 : f32
    %132 = vector.broadcast %cst_45 : f32 to vector<2x32xf32>
    %133 = arith.addf %131, %132 : vector<2x32xf32>
    %134 = vector.extract_strided_slice %128 {offsets = [0, 32], sizes = [2, 32], strides = [1, 1]} : vector<2x128xf32> to vector<2x32xf32>
    %cst_46 = arith.constant 5.000000e-01 : f32
    %135 = vector.broadcast %cst_46 : f32 to vector<2x32xf32>
    %136 = arith.mulf %135, %134 : vector<2x32xf32>
    %cst_47 = arith.constant 5.000000e-01 : f32
    %137 = vector.broadcast %cst_47 : f32 to vector<2x32xf32>
    %138 = arith.addf %136, %137 : vector<2x32xf32>
    %139 = vector.extract_strided_slice %128 {offsets = [0, 64], sizes = [2, 32], strides = [1, 1]} : vector<2x128xf32> to vector<2x32xf32>
    %140 = vector.extract_strided_slice %128 {offsets = [0, 96], sizes = [2, 32], strides = [1, 1]} : vector<2x128xf32> to vector<2x32xf32>
    %cst_48 = arith.constant 5.000000e-01 : f32
    %141 = vector.broadcast %cst_48 : f32 to vector<2x32xf32>
    %142 = arith.mulf %141, %140 : vector<2x32xf32>
    %cst_49 = arith.constant 5.000000e-01 : f32
    %143 = vector.broadcast %cst_49 : f32 to vector<2x32xf32>
    %144 = arith.addf %142, %143 : vector<2x32xf32>
    %145 = arith.mulf %138, %90 : vector<2x32xf32>
    %146 = arith.mulf %133, %139 : vector<2x32xf32>
    %147 = arith.addf %145, %146 : vector<2x32xf32>
    %148 = tpu.concatenate %127, %147 in 1 : vector<2x32xf32>, vector<2x32xf32> -> vector<2x64xf32>
    %149 = math.tanh %148 : vector<2x64xf32>
    %150 = vector.extract_strided_slice %149 {offsets = [0, 0], sizes = [2, 32], strides = [1, 1]} : vector<2x64xf32> to vector<2x32xf32>
    %151 = arith.mulf %124, %150 : vector<2x32xf32>
    %152 = vector.extract_strided_slice %149 {offsets = [0, 32], sizes = [2, 32], strides = [1, 1]} : vector<2x64xf32> to vector<2x32xf32>
    %153 = arith.mulf %144, %152 : vector<2x32xf32>
    %154 = tpu.concatenate %151, %153 in 1 : vector<2x32xf32>, vector<2x32xf32> -> vector<2x64xf32>
    %155 = arith.truncf %154 : vector<2x64xf32> to vector<2x64xbf16>
    %cst_50 = arith.constant dense<0.000000e+00> : vector<2x256xf32>
    %156 = tpu.matmul %155, %6, %cst_50 {dimension_numbers = #tpu.dot_dimension_numbers<[1], [0], [0], [1], [0, 0, 1, 1], [], []>} : vector<2x64xbf16>, vector<64x256xbf16>, vector<2x256xf32> -> vector<2x256xf32>
    %157 = vector.extract_strided_slice %156 {offsets = [0, 0], sizes = [2, 128], strides = [1, 1]} : vector<2x256xf32> to vector<2x128xf32>
    %158 = vector.extract_strided_slice %5 {offsets = [6, 0], sizes = [2, 128], strides = [1, 1]} : vector<16x128xf32> to vector<2x128xf32>
    %159 = arith.addf %157, %158 : vector<2x128xf32>
    %160 = vector.extract_strided_slice %156 {offsets = [0, 128], sizes = [2, 128], strides = [1, 1]} : vector<2x256xf32> to vector<2x128xf32>
    %161 = vector.broadcast %7 : vector<1x128xf32> to vector<2x128xf32>
    %162 = arith.addf %160, %161 : vector<2x128xf32>
    %163 = tpu.concatenate %159, %162 in 1 : vector<2x128xf32>, vector<2x128xf32> -> vector<2x256xf32>
    %164 = math.tanh %163 : vector<2x256xf32>
    %165 = vector.extract_strided_slice %164 {offsets = [0, 0], sizes = [2, 128], strides = [1, 1]} : vector<2x256xf32> to vector<2x128xf32>
    %166 = vector.extract_strided_slice %165 {offsets = [0, 0], sizes = [2, 32], strides = [1, 1]} : vector<2x128xf32> to vector<2x32xf32>
    %cst_51 = arith.constant 5.000000e-01 : f32
    %167 = vector.broadcast %cst_51 : f32 to vector<2x32xf32>
    %168 = arith.mulf %167, %166 : vector<2x32xf32>
    %cst_52 = arith.constant 5.000000e-01 : f32
    %169 = vector.broadcast %cst_52 : f32 to vector<2x32xf32>
    %170 = arith.addf %168, %169 : vector<2x32xf32>
    %171 = vector.extract_strided_slice %165 {offsets = [0, 32], sizes = [2, 32], strides = [1, 1]} : vector<2x128xf32> to vector<2x32xf32>
    %cst_53 = arith.constant 5.000000e-01 : f32
    %172 = vector.broadcast %cst_53 : f32 to vector<2x32xf32>
    %173 = arith.mulf %172, %171 : vector<2x32xf32>
    %cst_54 = arith.constant 5.000000e-01 : f32
    %174 = vector.broadcast %cst_54 : f32 to vector<2x32xf32>
    %175 = arith.addf %173, %174 : vector<2x32xf32>
    %176 = vector.extract_strided_slice %165 {offsets = [0, 64], sizes = [2, 32], strides = [1, 1]} : vector<2x128xf32> to vector<2x32xf32>
    %177 = vector.extract_strided_slice %165 {offsets = [0, 96], sizes = [2, 32], strides = [1, 1]} : vector<2x128xf32> to vector<2x32xf32>
    %cst_55 = arith.constant 5.000000e-01 : f32
    %178 = vector.broadcast %cst_55 : f32 to vector<2x32xf32>
    %179 = arith.mulf %178, %177 : vector<2x32xf32>
    %cst_56 = arith.constant 5.000000e-01 : f32
    %180 = vector.broadcast %cst_56 : f32 to vector<2x32xf32>
    %181 = arith.addf %179, %180 : vector<2x32xf32>
    %182 = arith.mulf %175, %127 : vector<2x32xf32>
    %183 = arith.mulf %170, %176 : vector<2x32xf32>
    %184 = arith.addf %182, %183 : vector<2x32xf32>
    %185 = vector.extract_strided_slice %164 {offsets = [0, 128], sizes = [2, 128], strides = [1, 1]} : vector<2x256xf32> to vector<2x128xf32>
    %186 = vector.extract_strided_slice %185 {offsets = [0, 0], sizes = [2, 32], strides = [1, 1]} : vector<2x128xf32> to vector<2x32xf32>
    %cst_57 = arith.constant 5.000000e-01 : f32
    %187 = vector.broadcast %cst_57 : f32 to vector<2x32xf32>
    %188 = arith.mulf %187, %186 : vector<2x32xf32>
    %cst_58 = arith.constant 5.000000e-01 : f32
    %189 = vector.broadcast %cst_58 : f32 to vector<2x32xf32>
    %190 = arith.addf %188, %189 : vector<2x32xf32>
    %191 = vector.extract_strided_slice %185 {offsets = [0, 32], sizes = [2, 32], strides = [1, 1]} : vector<2x128xf32> to vector<2x32xf32>
    %cst_59 = arith.constant 5.000000e-01 : f32
    %192 = vector.broadcast %cst_59 : f32 to vector<2x32xf32>
    %193 = arith.mulf %192, %191 : vector<2x32xf32>
    %cst_60 = arith.constant 5.000000e-01 : f32
    %194 = vector.broadcast %cst_60 : f32 to vector<2x32xf32>
    %195 = arith.addf %193, %194 : vector<2x32xf32>
    %196 = vector.extract_strided_slice %185 {offsets = [0, 64], sizes = [2, 32], strides = [1, 1]} : vector<2x128xf32> to vector<2x32xf32>
    %197 = vector.extract_strided_slice %185 {offsets = [0, 96], sizes = [2, 32], strides = [1, 1]} : vector<2x128xf32> to vector<2x32xf32>
    %cst_61 = arith.constant 5.000000e-01 : f32
    %198 = vector.broadcast %cst_61 : f32 to vector<2x32xf32>
    %199 = arith.mulf %198, %197 : vector<2x32xf32>
    %cst_62 = arith.constant 5.000000e-01 : f32
    %200 = vector.broadcast %cst_62 : f32 to vector<2x32xf32>
    %201 = arith.addf %199, %200 : vector<2x32xf32>
    %202 = arith.mulf %195, %147 : vector<2x32xf32>
    %203 = arith.mulf %190, %196 : vector<2x32xf32>
    %204 = arith.addf %202, %203 : vector<2x32xf32>
    %205 = tpu.concatenate %184, %204 in 1 : vector<2x32xf32>, vector<2x32xf32> -> vector<2x64xf32>
    %206 = math.tanh %205 : vector<2x64xf32>
    %207 = vector.extract_strided_slice %206 {offsets = [0, 0], sizes = [2, 32], strides = [1, 1]} : vector<2x64xf32> to vector<2x32xf32>
    %208 = arith.mulf %181, %207 : vector<2x32xf32>
    %209 = vector.extract_strided_slice %206 {offsets = [0, 32], sizes = [2, 32], strides = [1, 1]} : vector<2x64xf32> to vector<2x32xf32>
    %210 = arith.mulf %201, %209 : vector<2x32xf32>
    %211 = tpu.concatenate %208, %210 in 1 : vector<2x32xf32>, vector<2x32xf32> -> vector<2x64xf32>
    %212 = arith.truncf %211 : vector<2x64xf32> to vector<2x64xbf16>
    %cst_63 = arith.constant dense<0.000000e+00> : vector<2x256xf32>
    %213 = tpu.matmul %212, %6, %cst_63 {dimension_numbers = #tpu.dot_dimension_numbers<[1], [0], [0], [1], [0, 0, 1, 1], [], []>} : vector<2x64xbf16>, vector<64x256xbf16>, vector<2x256xf32> -> vector<2x256xf32>
    %214 = vector.extract_strided_slice %213 {offsets = [0, 0], sizes = [2, 128], strides = [1, 1]} : vector<2x256xf32> to vector<2x128xf32>
    %215 = vector.extract_strided_slice %5 {offsets = [8, 0], sizes = [2, 128], strides = [1, 1]} : vector<16x128xf32> to vector<2x128xf32>
    %216 = arith.addf %214, %215 : vector<2x128xf32>
    %217 = vector.extract_strided_slice %213 {offsets = [0, 128], sizes = [2, 128], strides = [1, 1]} : vector<2x256xf32> to vector<2x128xf32>
    %218 = vector.broadcast %7 : vector<1x128xf32> to vector<2x128xf32>
    %219 = arith.addf %217, %218 : vector<2x128xf32>
    %220 = tpu.concatenate %216, %219 in 1 : vector<2x128xf32>, vector<2x128xf32> -> vector<2x256xf32>
    %221 = math.tanh %220 : vector<2x256xf32>
    %222 = vector.extract_strided_slice %221 {offsets = [0, 0], sizes = [2, 128], strides = [1, 1]} : vector<2x256xf32> to vector<2x128xf32>
    %223 = vector.extract_strided_slice %222 {offsets = [0, 0], sizes = [2, 32], strides = [1, 1]} : vector<2x128xf32> to vector<2x32xf32>
    %cst_64 = arith.constant 5.000000e-01 : f32
    %224 = vector.broadcast %cst_64 : f32 to vector<2x32xf32>
    %225 = arith.mulf %224, %223 : vector<2x32xf32>
    %cst_65 = arith.constant 5.000000e-01 : f32
    %226 = vector.broadcast %cst_65 : f32 to vector<2x32xf32>
    %227 = arith.addf %225, %226 : vector<2x32xf32>
    %228 = vector.extract_strided_slice %222 {offsets = [0, 32], sizes = [2, 32], strides = [1, 1]} : vector<2x128xf32> to vector<2x32xf32>
    %cst_66 = arith.constant 5.000000e-01 : f32
    %229 = vector.broadcast %cst_66 : f32 to vector<2x32xf32>
    %230 = arith.mulf %229, %228 : vector<2x32xf32>
    %cst_67 = arith.constant 5.000000e-01 : f32
    %231 = vector.broadcast %cst_67 : f32 to vector<2x32xf32>
    %232 = arith.addf %230, %231 : vector<2x32xf32>
    %233 = vector.extract_strided_slice %222 {offsets = [0, 64], sizes = [2, 32], strides = [1, 1]} : vector<2x128xf32> to vector<2x32xf32>
    %234 = vector.extract_strided_slice %222 {offsets = [0, 96], sizes = [2, 32], strides = [1, 1]} : vector<2x128xf32> to vector<2x32xf32>
    %cst_68 = arith.constant 5.000000e-01 : f32
    %235 = vector.broadcast %cst_68 : f32 to vector<2x32xf32>
    %236 = arith.mulf %235, %234 : vector<2x32xf32>
    %cst_69 = arith.constant 5.000000e-01 : f32
    %237 = vector.broadcast %cst_69 : f32 to vector<2x32xf32>
    %238 = arith.addf %236, %237 : vector<2x32xf32>
    %239 = arith.mulf %232, %184 : vector<2x32xf32>
    %240 = arith.mulf %227, %233 : vector<2x32xf32>
    %241 = arith.addf %239, %240 : vector<2x32xf32>
    %242 = vector.extract_strided_slice %221 {offsets = [0, 128], sizes = [2, 128], strides = [1, 1]} : vector<2x256xf32> to vector<2x128xf32>
    %243 = vector.extract_strided_slice %242 {offsets = [0, 0], sizes = [2, 32], strides = [1, 1]} : vector<2x128xf32> to vector<2x32xf32>
    %cst_70 = arith.constant 5.000000e-01 : f32
    %244 = vector.broadcast %cst_70 : f32 to vector<2x32xf32>
    %245 = arith.mulf %244, %243 : vector<2x32xf32>
    %cst_71 = arith.constant 5.000000e-01 : f32
    %246 = vector.broadcast %cst_71 : f32 to vector<2x32xf32>
    %247 = arith.addf %245, %246 : vector<2x32xf32>
    %248 = vector.extract_strided_slice %242 {offsets = [0, 32], sizes = [2, 32], strides = [1, 1]} : vector<2x128xf32> to vector<2x32xf32>
    %cst_72 = arith.constant 5.000000e-01 : f32
    %249 = vector.broadcast %cst_72 : f32 to vector<2x32xf32>
    %250 = arith.mulf %249, %248 : vector<2x32xf32>
    %cst_73 = arith.constant 5.000000e-01 : f32
    %251 = vector.broadcast %cst_73 : f32 to vector<2x32xf32>
    %252 = arith.addf %250, %251 : vector<2x32xf32>
    %253 = vector.extract_strided_slice %242 {offsets = [0, 64], sizes = [2, 32], strides = [1, 1]} : vector<2x128xf32> to vector<2x32xf32>
    %254 = vector.extract_strided_slice %242 {offsets = [0, 96], sizes = [2, 32], strides = [1, 1]} : vector<2x128xf32> to vector<2x32xf32>
    %cst_74 = arith.constant 5.000000e-01 : f32
    %255 = vector.broadcast %cst_74 : f32 to vector<2x32xf32>
    %256 = arith.mulf %255, %254 : vector<2x32xf32>
    %cst_75 = arith.constant 5.000000e-01 : f32
    %257 = vector.broadcast %cst_75 : f32 to vector<2x32xf32>
    %258 = arith.addf %256, %257 : vector<2x32xf32>
    %259 = arith.mulf %252, %204 : vector<2x32xf32>
    %260 = arith.mulf %247, %253 : vector<2x32xf32>
    %261 = arith.addf %259, %260 : vector<2x32xf32>
    %262 = tpu.concatenate %241, %261 in 1 : vector<2x32xf32>, vector<2x32xf32> -> vector<2x64xf32>
    %263 = math.tanh %262 : vector<2x64xf32>
    %264 = vector.extract_strided_slice %263 {offsets = [0, 0], sizes = [2, 32], strides = [1, 1]} : vector<2x64xf32> to vector<2x32xf32>
    %265 = arith.mulf %238, %264 : vector<2x32xf32>
    %266 = vector.extract_strided_slice %263 {offsets = [0, 32], sizes = [2, 32], strides = [1, 1]} : vector<2x64xf32> to vector<2x32xf32>
    %267 = arith.mulf %258, %266 : vector<2x32xf32>
    %268 = tpu.concatenate %265, %267 in 1 : vector<2x32xf32>, vector<2x32xf32> -> vector<2x64xf32>
    %269 = arith.truncf %268 : vector<2x64xf32> to vector<2x64xbf16>
    %cst_76 = arith.constant dense<0.000000e+00> : vector<2x256xf32>
    %270 = tpu.matmul %269, %6, %cst_76 {dimension_numbers = #tpu.dot_dimension_numbers<[1], [0], [0], [1], [0, 0, 1, 1], [], []>} : vector<2x64xbf16>, vector<64x256xbf16>, vector<2x256xf32> -> vector<2x256xf32>
    %271 = vector.extract_strided_slice %270 {offsets = [0, 0], sizes = [2, 128], strides = [1, 1]} : vector<2x256xf32> to vector<2x128xf32>
    %272 = vector.extract_strided_slice %5 {offsets = [10, 0], sizes = [2, 128], strides = [1, 1]} : vector<16x128xf32> to vector<2x128xf32>
    %273 = arith.addf %271, %272 : vector<2x128xf32>
    %274 = vector.extract_strided_slice %270 {offsets = [0, 128], sizes = [2, 128], strides = [1, 1]} : vector<2x256xf32> to vector<2x128xf32>
    %275 = vector.broadcast %7 : vector<1x128xf32> to vector<2x128xf32>
    %276 = arith.addf %274, %275 : vector<2x128xf32>
    %277 = tpu.concatenate %273, %276 in 1 : vector<2x128xf32>, vector<2x128xf32> -> vector<2x256xf32>
    %278 = math.tanh %277 : vector<2x256xf32>
    %279 = vector.extract_strided_slice %278 {offsets = [0, 0], sizes = [2, 128], strides = [1, 1]} : vector<2x256xf32> to vector<2x128xf32>
    %280 = vector.extract_strided_slice %279 {offsets = [0, 0], sizes = [2, 32], strides = [1, 1]} : vector<2x128xf32> to vector<2x32xf32>
    %cst_77 = arith.constant 5.000000e-01 : f32
    %281 = vector.broadcast %cst_77 : f32 to vector<2x32xf32>
    %282 = arith.mulf %281, %280 : vector<2x32xf32>
    %cst_78 = arith.constant 5.000000e-01 : f32
    %283 = vector.broadcast %cst_78 : f32 to vector<2x32xf32>
    %284 = arith.addf %282, %283 : vector<2x32xf32>
    %285 = vector.extract_strided_slice %279 {offsets = [0, 32], sizes = [2, 32], strides = [1, 1]} : vector<2x128xf32> to vector<2x32xf32>
    %cst_79 = arith.constant 5.000000e-01 : f32
    %286 = vector.broadcast %cst_79 : f32 to vector<2x32xf32>
    %287 = arith.mulf %286, %285 : vector<2x32xf32>
    %cst_80 = arith.constant 5.000000e-01 : f32
    %288 = vector.broadcast %cst_80 : f32 to vector<2x32xf32>
    %289 = arith.addf %287, %288 : vector<2x32xf32>
    %290 = vector.extract_strided_slice %279 {offsets = [0, 64], sizes = [2, 32], strides = [1, 1]} : vector<2x128xf32> to vector<2x32xf32>
    %291 = vector.extract_strided_slice %279 {offsets = [0, 96], sizes = [2, 32], strides = [1, 1]} : vector<2x128xf32> to vector<2x32xf32>
    %cst_81 = arith.constant 5.000000e-01 : f32
    %292 = vector.broadcast %cst_81 : f32 to vector<2x32xf32>
    %293 = arith.mulf %292, %291 : vector<2x32xf32>
    %cst_82 = arith.constant 5.000000e-01 : f32
    %294 = vector.broadcast %cst_82 : f32 to vector<2x32xf32>
    %295 = arith.addf %293, %294 : vector<2x32xf32>
    %296 = arith.mulf %289, %241 : vector<2x32xf32>
    %297 = arith.mulf %284, %290 : vector<2x32xf32>
    %298 = arith.addf %296, %297 : vector<2x32xf32>
    %299 = vector.extract_strided_slice %278 {offsets = [0, 128], sizes = [2, 128], strides = [1, 1]} : vector<2x256xf32> to vector<2x128xf32>
    %300 = vector.extract_strided_slice %299 {offsets = [0, 0], sizes = [2, 32], strides = [1, 1]} : vector<2x128xf32> to vector<2x32xf32>
    %cst_83 = arith.constant 5.000000e-01 : f32
    %301 = vector.broadcast %cst_83 : f32 to vector<2x32xf32>
    %302 = arith.mulf %301, %300 : vector<2x32xf32>
    %cst_84 = arith.constant 5.000000e-01 : f32
    %303 = vector.broadcast %cst_84 : f32 to vector<2x32xf32>
    %304 = arith.addf %302, %303 : vector<2x32xf32>
    %305 = vector.extract_strided_slice %299 {offsets = [0, 32], sizes = [2, 32], strides = [1, 1]} : vector<2x128xf32> to vector<2x32xf32>
    %cst_85 = arith.constant 5.000000e-01 : f32
    %306 = vector.broadcast %cst_85 : f32 to vector<2x32xf32>
    %307 = arith.mulf %306, %305 : vector<2x32xf32>
    %cst_86 = arith.constant 5.000000e-01 : f32
    %308 = vector.broadcast %cst_86 : f32 to vector<2x32xf32>
    %309 = arith.addf %307, %308 : vector<2x32xf32>
    %310 = vector.extract_strided_slice %299 {offsets = [0, 64], sizes = [2, 32], strides = [1, 1]} : vector<2x128xf32> to vector<2x32xf32>
    %311 = vector.extract_strided_slice %299 {offsets = [0, 96], sizes = [2, 32], strides = [1, 1]} : vector<2x128xf32> to vector<2x32xf32>
    %cst_87 = arith.constant 5.000000e-01 : f32
    %312 = vector.broadcast %cst_87 : f32 to vector<2x32xf32>
    %313 = arith.mulf %312, %311 : vector<2x32xf32>
    %cst_88 = arith.constant 5.000000e-01 : f32
    %314 = vector.broadcast %cst_88 : f32 to vector<2x32xf32>
    %315 = arith.addf %313, %314 : vector<2x32xf32>
    %316 = arith.mulf %309, %261 : vector<2x32xf32>
    %317 = arith.mulf %304, %310 : vector<2x32xf32>
    %318 = arith.addf %316, %317 : vector<2x32xf32>
    %319 = tpu.concatenate %298, %318 in 1 : vector<2x32xf32>, vector<2x32xf32> -> vector<2x64xf32>
    %320 = math.tanh %319 : vector<2x64xf32>
    %321 = vector.extract_strided_slice %320 {offsets = [0, 0], sizes = [2, 32], strides = [1, 1]} : vector<2x64xf32> to vector<2x32xf32>
    %322 = arith.mulf %295, %321 : vector<2x32xf32>
    %323 = vector.extract_strided_slice %320 {offsets = [0, 32], sizes = [2, 32], strides = [1, 1]} : vector<2x64xf32> to vector<2x32xf32>
    %324 = arith.mulf %315, %323 : vector<2x32xf32>
    %325 = tpu.concatenate %322, %324 in 1 : vector<2x32xf32>, vector<2x32xf32> -> vector<2x64xf32>
    %326 = arith.truncf %325 : vector<2x64xf32> to vector<2x64xbf16>
    %cst_89 = arith.constant dense<0.000000e+00> : vector<2x256xf32>
    %327 = tpu.matmul %326, %6, %cst_89 {dimension_numbers = #tpu.dot_dimension_numbers<[1], [0], [0], [1], [0, 0, 1, 1], [], []>} : vector<2x64xbf16>, vector<64x256xbf16>, vector<2x256xf32> -> vector<2x256xf32>
    %328 = vector.extract_strided_slice %327 {offsets = [0, 0], sizes = [2, 128], strides = [1, 1]} : vector<2x256xf32> to vector<2x128xf32>
    %329 = vector.extract_strided_slice %5 {offsets = [12, 0], sizes = [2, 128], strides = [1, 1]} : vector<16x128xf32> to vector<2x128xf32>
    %330 = arith.addf %328, %329 : vector<2x128xf32>
    %331 = vector.extract_strided_slice %327 {offsets = [0, 128], sizes = [2, 128], strides = [1, 1]} : vector<2x256xf32> to vector<2x128xf32>
    %332 = vector.broadcast %7 : vector<1x128xf32> to vector<2x128xf32>
    %333 = arith.addf %331, %332 : vector<2x128xf32>
    %334 = tpu.concatenate %330, %333 in 1 : vector<2x128xf32>, vector<2x128xf32> -> vector<2x256xf32>
    %335 = math.tanh %334 : vector<2x256xf32>
    %336 = vector.extract_strided_slice %335 {offsets = [0, 0], sizes = [2, 128], strides = [1, 1]} : vector<2x256xf32> to vector<2x128xf32>
    %337 = vector.extract_strided_slice %336 {offsets = [0, 0], sizes = [2, 32], strides = [1, 1]} : vector<2x128xf32> to vector<2x32xf32>
    %cst_90 = arith.constant 5.000000e-01 : f32
    %338 = vector.broadcast %cst_90 : f32 to vector<2x32xf32>
    %339 = arith.mulf %338, %337 : vector<2x32xf32>
    %cst_91 = arith.constant 5.000000e-01 : f32
    %340 = vector.broadcast %cst_91 : f32 to vector<2x32xf32>
    %341 = arith.addf %339, %340 : vector<2x32xf32>
    %342 = vector.extract_strided_slice %336 {offsets = [0, 32], sizes = [2, 32], strides = [1, 1]} : vector<2x128xf32> to vector<2x32xf32>
    %cst_92 = arith.constant 5.000000e-01 : f32
    %343 = vector.broadcast %cst_92 : f32 to vector<2x32xf32>
    %344 = arith.mulf %343, %342 : vector<2x32xf32>
    %cst_93 = arith.constant 5.000000e-01 : f32
    %345 = vector.broadcast %cst_93 : f32 to vector<2x32xf32>
    %346 = arith.addf %344, %345 : vector<2x32xf32>
    %347 = vector.extract_strided_slice %336 {offsets = [0, 64], sizes = [2, 32], strides = [1, 1]} : vector<2x128xf32> to vector<2x32xf32>
    %348 = vector.extract_strided_slice %336 {offsets = [0, 96], sizes = [2, 32], strides = [1, 1]} : vector<2x128xf32> to vector<2x32xf32>
    %cst_94 = arith.constant 5.000000e-01 : f32
    %349 = vector.broadcast %cst_94 : f32 to vector<2x32xf32>
    %350 = arith.mulf %349, %348 : vector<2x32xf32>
    %cst_95 = arith.constant 5.000000e-01 : f32
    %351 = vector.broadcast %cst_95 : f32 to vector<2x32xf32>
    %352 = arith.addf %350, %351 : vector<2x32xf32>
    %353 = arith.mulf %346, %298 : vector<2x32xf32>
    %354 = arith.mulf %341, %347 : vector<2x32xf32>
    %355 = arith.addf %353, %354 : vector<2x32xf32>
    %356 = vector.extract_strided_slice %335 {offsets = [0, 128], sizes = [2, 128], strides = [1, 1]} : vector<2x256xf32> to vector<2x128xf32>
    %357 = vector.extract_strided_slice %356 {offsets = [0, 0], sizes = [2, 32], strides = [1, 1]} : vector<2x128xf32> to vector<2x32xf32>
    %cst_96 = arith.constant 5.000000e-01 : f32
    %358 = vector.broadcast %cst_96 : f32 to vector<2x32xf32>
    %359 = arith.mulf %358, %357 : vector<2x32xf32>
    %cst_97 = arith.constant 5.000000e-01 : f32
    %360 = vector.broadcast %cst_97 : f32 to vector<2x32xf32>
    %361 = arith.addf %359, %360 : vector<2x32xf32>
    %362 = vector.extract_strided_slice %356 {offsets = [0, 32], sizes = [2, 32], strides = [1, 1]} : vector<2x128xf32> to vector<2x32xf32>
    %cst_98 = arith.constant 5.000000e-01 : f32
    %363 = vector.broadcast %cst_98 : f32 to vector<2x32xf32>
    %364 = arith.mulf %363, %362 : vector<2x32xf32>
    %cst_99 = arith.constant 5.000000e-01 : f32
    %365 = vector.broadcast %cst_99 : f32 to vector<2x32xf32>
    %366 = arith.addf %364, %365 : vector<2x32xf32>
    %367 = vector.extract_strided_slice %356 {offsets = [0, 64], sizes = [2, 32], strides = [1, 1]} : vector<2x128xf32> to vector<2x32xf32>
    %368 = vector.extract_strided_slice %356 {offsets = [0, 96], sizes = [2, 32], strides = [1, 1]} : vector<2x128xf32> to vector<2x32xf32>
    %cst_100 = arith.constant 5.000000e-01 : f32
    %369 = vector.broadcast %cst_100 : f32 to vector<2x32xf32>
    %370 = arith.mulf %369, %368 : vector<2x32xf32>
    %cst_101 = arith.constant 5.000000e-01 : f32
    %371 = vector.broadcast %cst_101 : f32 to vector<2x32xf32>
    %372 = arith.addf %370, %371 : vector<2x32xf32>
    %373 = arith.mulf %366, %318 : vector<2x32xf32>
    %374 = arith.mulf %361, %367 : vector<2x32xf32>
    %375 = arith.addf %373, %374 : vector<2x32xf32>
    %376 = tpu.concatenate %355, %375 in 1 : vector<2x32xf32>, vector<2x32xf32> -> vector<2x64xf32>
    %377 = math.tanh %376 : vector<2x64xf32>
    %378 = vector.extract_strided_slice %377 {offsets = [0, 0], sizes = [2, 32], strides = [1, 1]} : vector<2x64xf32> to vector<2x32xf32>
    %379 = arith.mulf %352, %378 : vector<2x32xf32>
    %380 = vector.extract_strided_slice %377 {offsets = [0, 32], sizes = [2, 32], strides = [1, 1]} : vector<2x64xf32> to vector<2x32xf32>
    %381 = arith.mulf %372, %380 : vector<2x32xf32>
    %382 = tpu.concatenate %379, %381 in 1 : vector<2x32xf32>, vector<2x32xf32> -> vector<2x64xf32>
    %383 = arith.truncf %382 : vector<2x64xf32> to vector<2x64xbf16>
    %cst_102 = arith.constant dense<0.000000e+00> : vector<2x256xf32>
    %384 = tpu.matmul %383, %6, %cst_102 {dimension_numbers = #tpu.dot_dimension_numbers<[1], [0], [0], [1], [0, 0, 1, 1], [], []>} : vector<2x64xbf16>, vector<64x256xbf16>, vector<2x256xf32> -> vector<2x256xf32>
    %385 = vector.extract_strided_slice %384 {offsets = [0, 0], sizes = [2, 128], strides = [1, 1]} : vector<2x256xf32> to vector<2x128xf32>
    %386 = vector.extract_strided_slice %5 {offsets = [14, 0], sizes = [2, 128], strides = [1, 1]} : vector<16x128xf32> to vector<2x128xf32>
    %387 = arith.addf %385, %386 : vector<2x128xf32>
    %388 = vector.extract_strided_slice %384 {offsets = [0, 128], sizes = [2, 128], strides = [1, 1]} : vector<2x256xf32> to vector<2x128xf32>
    %389 = vector.broadcast %7 : vector<1x128xf32> to vector<2x128xf32>
    %390 = arith.addf %388, %389 : vector<2x128xf32>
    %391 = tpu.concatenate %387, %390 in 1 : vector<2x128xf32>, vector<2x128xf32> -> vector<2x256xf32>
    %392 = math.tanh %391 : vector<2x256xf32>
    %393 = vector.extract_strided_slice %392 {offsets = [0, 0], sizes = [2, 128], strides = [1, 1]} : vector<2x256xf32> to vector<2x128xf32>
    %394 = vector.extract_strided_slice %393 {offsets = [0, 0], sizes = [2, 32], strides = [1, 1]} : vector<2x128xf32> to vector<2x32xf32>
    %cst_103 = arith.constant 5.000000e-01 : f32
    %395 = vector.broadcast %cst_103 : f32 to vector<2x32xf32>
    %396 = arith.mulf %395, %394 : vector<2x32xf32>
    %cst_104 = arith.constant 5.000000e-01 : f32
    %397 = vector.broadcast %cst_104 : f32 to vector<2x32xf32>
    %398 = arith.addf %396, %397 : vector<2x32xf32>
    %399 = vector.extract_strided_slice %393 {offsets = [0, 32], sizes = [2, 32], strides = [1, 1]} : vector<2x128xf32> to vector<2x32xf32>
    %cst_105 = arith.constant 5.000000e-01 : f32
    %400 = vector.broadcast %cst_105 : f32 to vector<2x32xf32>
    %401 = arith.mulf %400, %399 : vector<2x32xf32>
    %cst_106 = arith.constant 5.000000e-01 : f32
    %402 = vector.broadcast %cst_106 : f32 to vector<2x32xf32>
    %403 = arith.addf %401, %402 : vector<2x32xf32>
    %404 = vector.extract_strided_slice %393 {offsets = [0, 64], sizes = [2, 32], strides = [1, 1]} : vector<2x128xf32> to vector<2x32xf32>
    %405 = vector.extract_strided_slice %393 {offsets = [0, 96], sizes = [2, 32], strides = [1, 1]} : vector<2x128xf32> to vector<2x32xf32>
    %cst_107 = arith.constant 5.000000e-01 : f32
    %406 = vector.broadcast %cst_107 : f32 to vector<2x32xf32>
    %407 = arith.mulf %406, %405 : vector<2x32xf32>
    %cst_108 = arith.constant 5.000000e-01 : f32
    %408 = vector.broadcast %cst_108 : f32 to vector<2x32xf32>
    %409 = arith.addf %407, %408 : vector<2x32xf32>
    %410 = arith.mulf %403, %355 : vector<2x32xf32>
    %411 = arith.mulf %398, %404 : vector<2x32xf32>
    %412 = arith.addf %410, %411 : vector<2x32xf32>
    %413 = vector.extract_strided_slice %392 {offsets = [0, 128], sizes = [2, 128], strides = [1, 1]} : vector<2x256xf32> to vector<2x128xf32>
    %414 = vector.extract_strided_slice %413 {offsets = [0, 0], sizes = [2, 32], strides = [1, 1]} : vector<2x128xf32> to vector<2x32xf32>
    %cst_109 = arith.constant 5.000000e-01 : f32
    %415 = vector.broadcast %cst_109 : f32 to vector<2x32xf32>
    %416 = arith.mulf %415, %414 : vector<2x32xf32>
    %cst_110 = arith.constant 5.000000e-01 : f32
    %417 = vector.broadcast %cst_110 : f32 to vector<2x32xf32>
    %418 = arith.addf %416, %417 : vector<2x32xf32>
    %419 = vector.extract_strided_slice %413 {offsets = [0, 32], sizes = [2, 32], strides = [1, 1]} : vector<2x128xf32> to vector<2x32xf32>
    %cst_111 = arith.constant 5.000000e-01 : f32
    %420 = vector.broadcast %cst_111 : f32 to vector<2x32xf32>
    %421 = arith.mulf %420, %419 : vector<2x32xf32>
    %cst_112 = arith.constant 5.000000e-01 : f32
    %422 = vector.broadcast %cst_112 : f32 to vector<2x32xf32>
    %423 = arith.addf %421, %422 : vector<2x32xf32>
    %424 = vector.extract_strided_slice %413 {offsets = [0, 64], sizes = [2, 32], strides = [1, 1]} : vector<2x128xf32> to vector<2x32xf32>
    %425 = vector.extract_strided_slice %413 {offsets = [0, 96], sizes = [2, 32], strides = [1, 1]} : vector<2x128xf32> to vector<2x32xf32>
    %cst_113 = arith.constant 5.000000e-01 : f32
    %426 = vector.broadcast %cst_113 : f32 to vector<2x32xf32>
    %427 = arith.mulf %426, %425 : vector<2x32xf32>
    %cst_114 = arith.constant 5.000000e-01 : f32
    %428 = vector.broadcast %cst_114 : f32 to vector<2x32xf32>
    %429 = arith.addf %427, %428 : vector<2x32xf32>
    %430 = arith.mulf %423, %375 : vector<2x32xf32>
    %431 = arith.mulf %418, %424 : vector<2x32xf32>
    %432 = arith.addf %430, %431 : vector<2x32xf32>
    %433 = tpu.concatenate %412, %432 in 1 : vector<2x32xf32>, vector<2x32xf32> -> vector<2x64xf32>
    %434 = math.tanh %433 : vector<2x64xf32>
    %435 = vector.extract_strided_slice %434 {offsets = [0, 0], sizes = [2, 32], strides = [1, 1]} : vector<2x64xf32> to vector<2x32xf32>
    %436 = arith.mulf %409, %435 : vector<2x32xf32>
    %437 = vector.extract_strided_slice %434 {offsets = [0, 32], sizes = [2, 32], strides = [1, 1]} : vector<2x64xf32> to vector<2x32xf32>
    %438 = arith.mulf %429, %437 : vector<2x32xf32>
    %439 = tpu.concatenate %436, %438 in 1 : vector<2x32xf32>, vector<2x32xf32> -> vector<2x64xf32>
    %440 = arith.truncf %439 : vector<2x64xf32> to vector<2x64xbf16>
    %cst_115 = arith.constant dense<0.000000e+00> : vector<2x256xf32>
    %441 = tpu.matmul %440, %6, %cst_115 {dimension_numbers = #tpu.dot_dimension_numbers<[1], [0], [0], [1], [0, 0, 1, 1], [], []>} : vector<2x64xbf16>, vector<64x256xbf16>, vector<2x256xf32> -> vector<2x256xf32>
    %442 = vector.extract_strided_slice %441 {offsets = [0, 128], sizes = [2, 128], strides = [1, 1]} : vector<2x256xf32> to vector<2x128xf32>
    %443 = vector.broadcast %7 : vector<1x128xf32> to vector<2x128xf32>
    %444 = arith.addf %442, %443 : vector<2x128xf32>
    %445 = math.tanh %444 : vector<2x128xf32>
    %446 = vector.extract_strided_slice %445 {offsets = [0, 0], sizes = [2, 32], strides = [1, 1]} : vector<2x128xf32> to vector<2x32xf32>
    %cst_116 = arith.constant 5.000000e-01 : f32
    %447 = vector.broadcast %cst_116 : f32 to vector<2x32xf32>
    %448 = arith.mulf %447, %446 : vector<2x32xf32>
    %cst_117 = arith.constant 5.000000e-01 : f32
    %449 = vector.broadcast %cst_117 : f32 to vector<2x32xf32>
    %450 = arith.addf %448, %449 : vector<2x32xf32>
    %451 = vector.extract_strided_slice %445 {offsets = [0, 32], sizes = [2, 32], strides = [1, 1]} : vector<2x128xf32> to vector<2x32xf32>
    %cst_118 = arith.constant 5.000000e-01 : f32
    %452 = vector.broadcast %cst_118 : f32 to vector<2x32xf32>
    %453 = arith.mulf %452, %451 : vector<2x32xf32>
    %cst_119 = arith.constant 5.000000e-01 : f32
    %454 = vector.broadcast %cst_119 : f32 to vector<2x32xf32>
    %455 = arith.addf %453, %454 : vector<2x32xf32>
    %456 = vector.extract_strided_slice %445 {offsets = [0, 64], sizes = [2, 32], strides = [1, 1]} : vector<2x128xf32> to vector<2x32xf32>
    %457 = vector.extract_strided_slice %445 {offsets = [0, 96], sizes = [2, 32], strides = [1, 1]} : vector<2x128xf32> to vector<2x32xf32>
    %cst_120 = arith.constant 5.000000e-01 : f32
    %458 = vector.broadcast %cst_120 : f32 to vector<2x32xf32>
    %459 = arith.mulf %458, %457 : vector<2x32xf32>
    %cst_121 = arith.constant 5.000000e-01 : f32
    %460 = vector.broadcast %cst_121 : f32 to vector<2x32xf32>
    %461 = arith.addf %459, %460 : vector<2x32xf32>
    %462 = arith.mulf %455, %432 : vector<2x32xf32>
    %463 = arith.mulf %450, %456 : vector<2x32xf32>
    %464 = arith.addf %462, %463 : vector<2x32xf32>
    %465 = math.tanh %464 : vector<2x32xf32>
    %466 = arith.mulf %461, %465 : vector<2x32xf32>
    %467 = tpu.concatenate %96, %153, %210, %267, %324, %381, %438, %466 in 0 : vector<2x32xf32>, vector<2x32xf32>, vector<2x32xf32>, vector<2x32xf32>, vector<2x32xf32>, vector<2x32xf32>, vector<2x32xf32>, vector<2x32xf32> -> vector<16x32xf32>
    %468 = arith.truncf %467 : vector<16x32xf32> to vector<16x32xbf16>
    %c0_122 = arith.constant 0 : index
    %c0_123 = arith.constant 0 : index
    %469 = vector.load %arg9[%c0_122, %c0_123] : memref<32x32xbf16, #tpu.memory_space<vmem>>, vector<32x32xbf16>
    %cst_124 = arith.constant dense<0.000000e+00> : vector<16x32xf32>
    %470 = tpu.matmul %468, %469, %cst_124 {dimension_numbers = #tpu.dot_dimension_numbers<[1], [0], [0], [1], [0, 0, 1, 1], [], []>} : vector<16x32xbf16>, vector<32x32xbf16>, vector<16x32xf32> -> vector<16x32xf32>
    %c0_125 = arith.constant 0 : index
    %c0_126 = arith.constant 0 : index
    %471 = vector.load %arg10[%c0_125, %c0_126] : memref<1x32xf32, #tpu.memory_space<vmem>>, vector<1x32xf32>
    %472 = vector.broadcast %471 : vector<1x32xf32> to vector<16x32xf32>
    %473 = arith.addf %470, %472 : vector<16x32xf32>
    %cst_127 = arith.constant dense<0xFF800000> : vector<16xf32>
    %474 = vector.multi_reduction <maximumf>, %473, %cst_127 [1] : vector<16x32xf32> to vector<16xf32>
    %475 = vector.shape_cast %474 : vector<16xf32> to vector<16x1xf32>
    %476 = vector.broadcast %475 : vector<16x1xf32> to vector<16x32xf32>
    %477 = arith.subf %473, %476 : vector<16x32xf32>
    %478 = math.exp %477 : vector<16x32xf32>
    %cst_128 = arith.constant dense<0.000000e+00> : vector<16xf32>
    %479 = vector.multi_reduction <add>, %478, %cst_128 [1] : vector<16x32xf32> to vector<16xf32>
    %480 = vector.shape_cast %479 : vector<16xf32> to vector<16x1xf32>
    %481 = math.log %480 : vector<16x1xf32>
    %482 = vector.broadcast %481 : vector<16x1xf32> to vector<16x32xf32>
    %483 = arith.subf %477, %482 : vector<16x32xf32>
    %c0_129 = arith.constant 0 : index
    %c0_130 = arith.constant 0 : index
    %484 = vector.load %arg11[%c0_129, %c0_130] : memref<16x32xf32, #tpu.memory_space<vmem>>, vector<16x32xf32>
    tpu.vector_store %arg11[%c0_129, %c0_130], %483 {strides = array<i32>} : memref<16x32xf32, #tpu.memory_space<vmem>>, vector<16x32xf32>,
    return
  }
}

</mosaic_0001>

<bundles_post_ra>
// kernel: lstm_forward.1
= control target key start
LH: loop header
LB: loop body
LE: loop exit
PB: predicated region body
PF: predicated region fallthrough
CT: control target
= control target key end

     0   :  { %v1270_v1 = vmov 0.0   ;;  %vm1271_vm0 = vmmov 0   ;;  %s1272_s19 = smov 32   ;;  %v1273_v4 = vmov 0   ;;  %vm61_vm1 = vcmask 130048   ;;  %s1274_s22 = smov 64   ;;  %s1652_s7 = inlined_call_operand.vmem [shape: f32[2,32], index: 7, kind: input, shape index: {}]   ;;  %s1653_s2 = inlined_call_operand.vmem [shape: bf16[64,256], index: 2, kind: input, shape index: {}]   ;;  %s1654_s1 = inlined_call_operand.vmem [shape: bf16[16,128], index: 1, kind: input, shape index: {}]   ;;  %s1655_s0 = inlined_call_operand.vmem [shape: bf16[16,16], index: 0, kind: input, shape index: {}]   ;;  %s1656_s6 = inlined_call_operand.vmem [shape: f32[2,32], index: 6, kind: input, shape index: {}]   ;;  %s1657_s5 = inlined_call_operand.vmem [shape: f32[2,32], index: 5, kind: input, shape index: {}]   ;;  %s1658_s3 = inlined_call_operand.vmem [shape: f32[1,128], index: 3, kind: input, shape index: {}]   ;;  %s1659_s4 = inlined_call_operand.vmem [shape: f32[1,128], index: 4, kind: input, shape index: {}]   ;;  %s1660_s8 = inlined_call_operand.vmem [shape: f32[2,32], index: 8, kind: input, shape index: {}]   ;;  %s1661_s9 = inlined_call_operand.vmem [shape: bf16[32,32], index: 9, kind: input, shape index: {}]   ;;  %s1662_s10 = inlined_call_operand.vmem [shape: f32[1,32], index: 10, kind: input, shape index: {}]   ;;  %s1663_s11 = inlined_call_operand.vmem [shape: f32[16,32], index: 11, kind: output, shape index: {}]  }
   0x1   :  { %v117_v0 = vld [vmem:[%s1652_s7] sm:$0x3]  ;;  %1176 = vmatprep.subr.bf16.mxu0 %v1270_v1  ;;  %1178 = vmatprep.mubr.msk.bf16.mxu0 %vm1271_vm0, %v1270_v1  ;;  %v1346_v2 = vld [vmem:[%s1653_s2 + $0x34] ss:$8 sps:$4 sm:$0xff]   ;;  %v1351_v3 = vld [vmem:[%s1653_s2 + $0x30] ss:$8 sps:$4 sm:$0xff]  }
   0x2   :  { %120 = vrot.lane.b32.xlu0 %v117_v0, %s1272_s19  ;;  %202 = vmatprep.mubr.bf16.mxu1 %v1273_v4  ;;  %v1357_v5 = vld [vmem:[%s1653_s2 + $0x24] ss:$8 sps:$4 sm:$0xff]   ;;  %v1366_v7 = vld [vmem:[%s1653_s2 + $0x20] ss:$8 sps:$4 sm:$0xff]   ;;  %v1376_v9 = vld [vmem:[%s1653_s2 + $0x14] ss:$8 sps:$4 sm:$0xff]  }
   0x3   :  { %178 = vmatprep.subr.bf16.mxu1 %v1346_v2  ;;  %v1201_v6 = vld [vmem:[%s1654_s1] sm:$0xff]   ;;  %v1383_v10 = vld [vmem:[%s1653_s2 + $0x10] ss:$8 sps:$4 sm:$0xff]   ;;  %vm123_vm2 = vcmask 261120   ;;  %vm166_vm3 = vcmask 523264   ;;  %vm1035_vm4 = vcmask 1041408  }
   0x4   :  { %179 = vmatpush1.bf16.msra.mxu1 %v1351_v3  ;;  %v1203_v8 = vld [vmem:[%s1655_s0] sm:$0xff]   ;;  %1177 = vmatpush3.bf16.msra.mxu0 %v1201_v6  ;;  %vm1037_vm5 = vcmask 1043456   ;;  %vm1039_vm6 = vcmask 1045504  }
   0x5   :  { %180 = vmatprep.subr.bf16.mxu1 %v1357_v5  ;;  %252 = vmatprep.subr.bf16.mxu0 %v1346_v2  ;;  %v116_v11 = vld [vmem:[%s1656_s6] sm:$0x3]  ;;  %v1392_v12 = vld [vmem:[%s1653_s2 + $0x4] ss:$8 sps:$4 sm:$0xff]  }
   0x6   :  { %215 = vrot.lane.b32.xlu1 %v116_v11, %s1272_s19  ;;  %v1402_v13 = vld [vmem:[%s1653_s2] ss:$8 sps:$4 sm:$0xff]  }
   0x7   :  { %1179 = vmatmul.mubr.msk.bf16.vlgmr.msra.gmra.mxu0 %vm61_vm1, %v1203_v8  ;;  %v115_v14 = vld [vmem:[%s1657_s5] sm:$0x3] }
   0x8   :  { %181 = vmatpush1.bf16.msra.mxu1 %v1366_v7  ;;  %253 = vmatpush1.bf16.msra.mxu0 %v1351_v3  ;;  %v1145_v19 = vld [vmem:[%s1658_s3] ss:$0 sm:$0xff] }
   0x9   :  { %182 = vmatprep.subr.bf16.mxu1 %v1376_v9  ;;  %276 = vmatprep.mubr.bf16.mxu0 %v1273_v4  ;;  %v1454_v47 = vld [vmem:[%s1659_s4] ss:$0 sm:$0xff]  ;;  %s1275_s4 = smov 96  }
   0xa   :  { %254 = vmatprep.subr.bf16.mxu0 %v1357_v5  ;;  %v118_v55 = vld [vmem:[%s1660_s8] sm:$0x3] }
   0xc   :  { %183 = vmatpush1.bf16.msra.mxu1 %v1383_v10  ;;  %255 = vmatpush1.bf16.msra.mxu0 %v1366_v7 }
   0xd   :  { %184 = vmatprep.subr.bf16.mxu1 %v1392_v12  ;;  %256 = vmatprep.subr.bf16.mxu0 %v1376_v9 }
  0x10   :  { %185 = vmatpush1.bf16.msra.mxu1 %v1402_v13  ;;  %257 = vmatpush1.bf16.msra.mxu0 %v1383_v10 }
  0x11   :  { %364 = vmatprep.subr.bf16.mxu1 %v1346_v2  ;;  %258 = vmatprep.subr.bf16.mxu0 %v1392_v12 }
  0x14   :  { %259 = vmatpush1.bf16.msra.mxu0 %v1402_v13 }
  0x15   :  { %465 = vmatprep.subr.bf16.mxu0 %v1346_v2 }
  0x74   :  { %v121_v15 = vpop.permute.xlu0 %120 }
  0x75   :  { %v124_v16 = vsel %vm123_vm2, %v115_v14, %v121_v15 }
  0x76   :  { %v125_v17 = vpack.c.bf16 %v124_v16, %v124_v16 }
  0x78   :  { %1157 = vmatmul.mubr.msk.bf16.vlgmr.msra.gmra.mxu1 %vm166_vm3, %v125_v17  ;;  %v216_v35 = vpop.permute.xlu1 %215 }
  0x79   :  { %365 = vmatpush1.bf16.msra.mxu1 %v1351_v3  ;;  %388 = vmatprep.mubr.bf16.mxu1 %v1273_v4 }
  0x7a   :  { %366 = vmatprep.subr.bf16.mxu1 %v1357_v5 }
  0x7d   :  { %367 = vmatpush1.bf16.msra.mxu1 %v1366_v7 }
  0x7e   :  { %368 = vmatprep.subr.bf16.mxu1 %v1376_v9 }
  0x81   :  { %369 = vmatpush1.bf16.msra.mxu1 %v1383_v10 }
  0x82   :  { %370 = vmatprep.subr.bf16.mxu1 %v1392_v12 }
  0x85   :  { %371 = vmatpush1.bf16.msra.mxu1 %v1402_v13 }
  0x86   :  { %566 = vmatprep.subr.bf16.mxu1 %v1346_v2 }
  0xc7   :  { %v99_v18 = vpop.f32.mrf.mxu0 }
  0xc8   :  { %v1432_v24 = vadd.f32 %v1145_v19, %v99_v18 }
  0xc9   :  { %v1180_v20 = vpop.f32.mrf.mxu0 }
  0xca   :  { %v286_v45 = vrot.slane %v1432_v24, 2 }
  0xcb   :  { %v102_v21 = vpop.f32.mrf.mxu0 }
  0xcc   :  { %v1430_v22 = vadd.f32 %v1145_v19, %v102_v21 }
  0xcd   :  { %v1181_v23 = vpop.f32.mrf.mxu0 }
 0x138   :  { %v204_v25 = vpop.f32.mrf.mxu1 }
 0x139   :  { %v210_v26 = vadd.f32 %v204_v25, %v1432_v24 }
 0x13a   :  { %v206_v27 = vpop.f32.mrf.mxu1 }
 0x13b   :  { %1212 = vtanh.f32 %v210_v26 }
 0x13c   :  { %v207_v28 = vpop.f32.mrf.mxu1 }
 0x13e   :  { %v208_v29 = vpop.f32.mrf.mxu1 }
 0x148   :  { %v1213_v30 = vpop.eup %1212 }
 0x149   :  { %220 = vrot.lane.b32.xlu0 %v1213_v30, %s1274_s22  ;;  %v212_v31 = vmul.f32 0.5, %v1213_v30  ;;  %v397_v30 = vrot.slane %v1432_v24, 4 }
 0x14b   :  { %v213_v32 = vadd.f32 0.5, %v212_v31 }
 0x14d   :  { %v218_v36 = vmul.f32 %v216_v35, %v213_v32 }
 0x1bb   :  { %v221_v33 = vpop.permute.xlu0 %220 }
 0x1bc   :  { %v223_v34 = vmul.f32 %v221_v33, %v213_v32 }
 0x1be   :  { %225 = vrot.lane.b32.xlu1 %v223_v34, %s1272_s19 }
 0x230   :  { %v226_v37 = vpop.permute.xlu1 %225 }
 0x231   :  { %v228_v38 = vadd.f32 %v226_v37, %v218_v36 }
 0x233   :  { %1214 = vtanh.f32 %v228_v38 }
 0x240   :  { %v1215_v39 = vpop.eup %1214 }
 0x241   :  { %231 = vrot.lane.b32.xlu0 %v1215_v39, %s1274_s22 }
 0x2b3   :  { %v232_v40 = vpop.permute.xlu0 %231 }
 0x2b4   :  { %v234_v41 = vmul.f32 %v232_v40, %v213_v32 }
 0x2b6   :  { %236 = vrot.lane.b32.xlu1 %v234_v41, %s1272_s19 }
 0x328   :  { %v237_v42 = vpop.permute.xlu1 %236 }
 0x329   :  { %v239_v43 = vsel %vm123_vm2, %v237_v42, %v121_v15 }
 0x32a   :  { %v240_v44 = vpack.c.bf16 %v239_v43, %v239_v43 }
 0x32c   :  { %1158 = vmatmul.mubr.msk.bf16.vlgmr.msra.gmra.mxu0 %vm166_vm3, %v240_v44 }
 0x32d   :  { %466 = vmatpush1.bf16.msra.mxu0 %v1351_v3  ;;  %489 = vmatprep.mubr.bf16.mxu0 %v1273_v4 }
 0x32e   :  { %467 = vmatprep.subr.bf16.mxu0 %v1357_v5 }
 0x331   :  { %468 = vmatpush1.bf16.msra.mxu0 %v1366_v7 }
 0x332   :  { %469 = vmatprep.subr.bf16.mxu0 %v1376_v9 }
 0x335   :  { %470 = vmatpush1.bf16.msra.mxu0 %v1383_v10 }
 0x336   :  { %471 = vmatprep.subr.bf16.mxu0 %v1392_v12 }
 0x339   :  { %472 = vmatpush1.bf16.msra.mxu0 %v1402_v13 }
 0x33a   :  { %665 = vmatprep.subr.bf16.mxu0 %v1346_v2 }
 0x3ec   :  { %v278_v46 = vpop.f32.mrf.mxu0 }
 0x3ed   :  { %v288_v48 = vadd.f32 %v286_v45, %v278_v46 }
 0x3ee   :  { %v280_v49 = vpop.f32.mrf.mxu0 }
 0x3ef   :  { %1216 = vtanh.f32 %v288_v48  ;;  %v295_v50 = vadd.f32 %v1454_v47, %v280_v49 }
 0x3f0   :  { %v282_v51 = vpop.f32.mrf.mxu0 }
 0x3f1   :  { %1218 = vtanh.f32 %v295_v50 }
 0x3f2   :  { %v283_v52 = vpop.f32.mrf.mxu0 }
 0x3fc   :  { %v1217_v53 = vpop.eup %1216 }
 0x3fd   :  { %302 = vrot.lane.b32.xlu0 %v1217_v53, %s1274_s22  ;;  %v298_v56 = vmul.f32 0.5, %v1217_v53 }
 0x3fe   :  { %v1219_v54 = vpop.eup %1218 }
 0x3ff   :  { %319 = vrot.lane.b32.xlu1 %v1219_v54, %s1274_s22  ;;  %v299_v57 = vadd.f32 0.5, %v298_v56  ;;  %v311_v58 = vmul.f32 0.5, %v1219_v54 }
 0x401   :  { %v312_v62 = vadd.f32 0.5, %v311_v58  ;;  %v300_v0 = vmul.f32 %v299_v57, %v228_v38 }
 0x403   :  { %314 = vrot.lane.b32.xlu1 %v118_v55, %s1272_s19 }
 0x46f   :  { %v303_v59 = vpop.permute.xlu0 %302 }
 0x470   :  { %v305_v60 = vmul.f32 %v303_v59, %v299_v57 }
 0x471   :  { %v320_v61 = vpop.permute.xlu1 %319 }
 0x472   :  { %307 = vrot.lane.b32.xlu0 %v305_v60, %s1272_s19  ;;  %v322_v63 = vmul.f32 %v320_v61, %v312_v62 }
 0x475   :  { %v315_v11 = vpop.permute.xlu1 %314 }
 0x476   :  { %324 = vrot.lane.b32.xlu0 %v322_v63, %s1272_s19  ;;  %v317_v15 = vmul.f32 %v315_v11, %v312_v62 }
 0x4e4   :  { %v308_v6 = vpop.permute.xlu0 %307 }
 0x4e5   :  { %v310_v8 = vadd.f32 %v308_v6, %v300_v0  ;;  %v498_v6 = vrot.slane %v1432_v24, 6 }
 0x4e7   :  { %329 = vrot.lane.b32.xlu1 %v310_v8, %s1275_s4 }
 0x4e8   :  { %v325_v14 = vpop.permute.xlu0 %324 }
 0x4e9   :  { %v327_v16 = vadd.f32 %v325_v14, %v317_v15 }
 0x559   :  { %v330_v17 = vpop.permute.xlu1 %329 }
 0x55a   :  { %v332_v18 = vsel %vm123_vm2, %v330_v17, %v327_v16 }
 0x55b   :  { %1220 = vtanh.f32 %v332_v18 }
 0x568   :  { %v1221_v19 = vpop.eup %1220 }
 0x569   :  { %339 = vrot.lane.b32.xlu1 %v1221_v19, %s1274_s22  ;;  %335 = vrot.lane.b32.xlu0 %v1221_v19, %s1275_s4 }
 0x5db   :  { %v340_v20 = vpop.permute.xlu1 %339  ;;  %v336_v21 = vpop.permute.xlu0 %335 }
 0x5dc   :  { %v1469_v23 = vmul.f32 %v340_v20, %v312_v62  ;;  %v338_v25 = vmul.f32 %v336_v21, %v299_v57 }
 0x5de   :  { %348 = vrot.lane.b32.xlu1 %v1469_v23, %s1274_s22  ;;  %344 = vrot.lane.b32.xlu0 %v338_v25, %s1272_s19 }
 0x650   :  { %v349_v26 = vpop.permute.xlu1 %348  ;;  %v345_v27 = vpop.permute.xlu0 %344 }
 0x651   :  { %v351_v28 = vsel %vm123_vm2, %v345_v27, %v349_v26 }
 0x652   :  { %v352_v29 = vpack.c.bf16 %v351_v28, %v351_v28 }
 0x654   :  { %1160 = vmatmul.mubr.msk.bf16.vlgmr.msra.gmra.mxu1 %vm166_vm3, %v352_v29 }
 0x655   :  { %567 = vmatpush1.bf16.msra.mxu1 %v1351_v3  ;;  %590 = vmatprep.mubr.bf16.mxu1 %v1273_v4 }
 0x656   :  { %568 = vmatprep.subr.bf16.mxu1 %v1357_v5 }
 0x659   :  { %569 = vmatpush1.bf16.msra.mxu1 %v1366_v7 }
 0x65a   :  { %570 = vmatprep.subr.bf16.mxu1 %v1376_v9 }
 0x65d   :  { %571 = vmatpush1.bf16.msra.mxu1 %v1383_v10 }
 0x65e   :  { %572 = vmatprep.subr.bf16.mxu1 %v1392_v12 }
 0x661   :  { %573 = vmatpush1.bf16.msra.mxu1 %v1402_v13 }
 0x662   :  { %767 = vmatprep.subr.bf16.mxu1 %v1346_v2 }
 0x714   :  { %v390_v31 = vpop.f32.mrf.mxu1 }
 0x715   :  { %v399_v32 = vadd.f32 %v397_v30, %v390_v31 }
 0x716   :  { %v392_v33 = vpop.f32.mrf.mxu1 }
 0x717   :  { %1222 = vtanh.f32 %v399_v32  ;;  %v400_v34 = vadd.f32 %v1454_v47, %v392_v33 }
 0x718   :  { %v394_v35 = vpop.f32.mrf.mxu1 }
 0x719   :  { %1224 = vtanh.f32 %v400_v34 }
 0x71a   :  { %v395_v36 = vpop.f32.mrf.mxu1 }
 0x724   :  { %v1223_v37 = vpop.eup %1222 }
 0x725   :  { %407 = vrot.lane.b32.xlu0 %v1223_v37, %s1274_s22  ;;  %v403_v39 = vmul.f32 0.5, %v1223_v37 }
 0x726   :  { %v1225_v38 = vpop.eup %1224 }
 0x727   :  { %420 = vrot.lane.b32.xlu1 %v1225_v38, %s1274_s22  ;;  %v416_v40 = vmul.f32 0.5, %v1225_v38  ;;  %v404_v41 = vadd.f32 0.5, %v403_v39 }
 0x729   :  { %v417_v44 = vadd.f32 0.5, %v416_v40  ;;  %v405_v48 = vmul.f32 %v404_v41, %v310_v8 }
 0x72b   :  { %v418_v52 = vmul.f32 %v417_v44, %v327_v16 }
 0x797   :  { %v408_v42 = vpop.permute.xlu0 %407 }
 0x798   :  { %v410_v43 = vmul.f32 %v408_v42, %v404_v41 }
 0x799   :  { %v421_v45 = vpop.permute.xlu1 %420 }
 0x79a   :  { %v423_v46 = vmul.f32 %v421_v45, %v417_v44  ;;  %412 = vrot.lane.b32.xlu0 %v410_v43, %s1272_s19 }
 0x79c   :  { %425 = vrot.lane.b32.xlu1 %v423_v46, %s1272_s19 }
 0x80c   :  { %v413_v49 = vpop.permute.xlu0 %412 }
 0x80d   :  { %v415_v50 = vadd.f32 %v413_v49, %v405_v48 }
 0x80e   :  { %v426_v51 = vpop.permute.xlu1 %425 }
 0x80f   :  { %430 = vrot.lane.b32.xlu0 %v415_v50, %s1275_s4  ;;  %v428_v53 = vadd.f32 %v426_v51, %v418_v52 }
 0x881   :  { %v431_v54 = vpop.permute.xlu0 %430 }
 0x882   :  { %v433_v55 = vsel %vm123_vm2, %v431_v54, %v428_v53 }
 0x883   :  { %1226 = vtanh.f32 %v433_v55 }
 0x890   :  { %v1227_v56 = vpop.eup %1226 }
 0x891   :  { %440 = vrot.lane.b32.xlu0 %v1227_v56, %s1274_s22  ;;  %436 = vrot.lane.b32.xlu1 %v1227_v56, %s1275_s4 }
 0x903   :  { %v441_v57 = vpop.permute.xlu0 %440  ;;  %v437_v58 = vpop.permute.xlu1 %436 }
 0x904   :  { %v1495_v59 = vmul.f32 %v441_v57, %v417_v44  ;;  %v439_v60 = vmul.f32 %v437_v58, %v404_v41 }
 0x906   :  { %449 = vrot.lane.b32.xlu0 %v1495_v59, %s1274_s22  ;;  %445 = vrot.lane.b32.xlu1 %v439_v60, %s1272_s19  ;;  %v1022_v39 = vrot.slane %v1495_v59, 6 }
 0x908   :  { %v1036_v45 = vsel %vm1035_vm4, %v1469_v23, %v1022_v39 }
 0x978   :  { %v450_v61 = vpop.permute.xlu0 %449  ;;  %v446_v62 = vpop.permute.xlu1 %445 }
 0x979   :  { %v452_v63 = vsel %vm123_vm2, %v446_v62, %v450_v61 }
 0x97a   :  { %v453_v0 = vpack.c.bf16 %v452_v63, %v452_v63 }
 0x97c   :  { %1161 = vmatmul.mubr.msk.bf16.vlgmr.msra.gmra.mxu0 %vm166_vm3, %v453_v0 }
 0x97d   :  { %666 = vmatpush1.bf16.msra.mxu0 %v1351_v3  ;;  %689 = vmatprep.mubr.bf16.mxu0 %v1273_v4 }
 0x97e   :  { %667 = vmatprep.subr.bf16.mxu0 %v1357_v5 }
 0x981   :  { %668 = vmatpush1.bf16.msra.mxu0 %v1366_v7 }
 0x982   :  { %669 = vmatprep.subr.bf16.mxu0 %v1376_v9 }
 0x985   :  { %670 = vmatpush1.bf16.msra.mxu0 %v1383_v10 }
 0x986   :  { %671 = vmatprep.subr.bf16.mxu0 %v1392_v12 }
 0x989   :  { %672 = vmatpush1.bf16.msra.mxu0 %v1402_v13 }
 0x98a   :  { %868 = vmatprep.subr.bf16.mxu0 %v1346_v2 }
 0xa3c   :  { %v491_v8 = vpop.f32.mrf.mxu0 }
 0xa3d   :  { %v500_v11 = vadd.f32 %v498_v6, %v491_v8 }
 0xa3e   :  { %v493_v14 = vpop.f32.mrf.mxu0 }
 0xa3f   :  { %1228 = vtanh.f32 %v500_v11  ;;  %v501_v15 = vadd.f32 %v1454_v47, %v493_v14 }
 0xa40   :  { %v495_v16 = vpop.f32.mrf.mxu0 }
 0xa41   :  { %1230 = vtanh.f32 %v501_v15 }
 0xa42   :  { %v496_v17 = vpop.f32.mrf.mxu0 }
 0xa4c   :  { %v1229_v18 = vpop.eup %1228 }
 0xa4d   :  { %508 = vrot.lane.b32.xlu1 %v1229_v18, %s1274_s22  ;;  %v504_v20 = vmul.f32 0.5, %v1229_v18 }
 0xa4e   :  { %v1231_v19 = vpop.eup %1230 }
 0xa4f   :  { %521 = vrot.lane.b32.xlu0 %v1231_v19, %s1274_s22  ;;  %v517_v21 = vmul.f32 0.5, %v1231_v19  ;;  %v505_v25 = vadd.f32 0.5, %v504_v20 }
 0xa51   :  { %v518_v27 = vadd.f32 0.5, %v517_v21  ;;  %v506_v30 = vmul.f32 %v505_v25, %v415_v50 }
 0xa53   :  { %v519_v34 = vmul.f32 %v518_v27, %v428_v53 }
 0xabf   :  { %v509_v26 = vpop.permute.xlu1 %508 }
 0xac0   :  { %v511_v24 = vmul.f32 %v509_v26, %v505_v25 }
 0xac1   :  { %v522_v28 = vpop.permute.xlu0 %521 }
 0xac2   :  { %v524_v29 = vmul.f32 %v522_v28, %v518_v27  ;;  %513 = vrot.lane.b32.xlu1 %v511_v24, %s1272_s19 }
 0xac4   :  { %526 = vrot.lane.b32.xlu0 %v524_v29, %s1272_s19 }
 0xb34   :  { %v514_v31 = vpop.permute.xlu1 %513 }
 0xb35   :  { %v516_v32 = vadd.f32 %v514_v31, %v506_v30 }
 0xb36   :  { %v527_v33 = vpop.permute.xlu0 %526 }
 0xb37   :  { %531 = vrot.lane.b32.xlu1 %v516_v32, %s1275_s4  ;;  %v529_v35 = vadd.f32 %v527_v33, %v519_v34  ;;  %v699_v33 = vrot.slane %v1430_v22, 2 }
 0xba9   :  { %v532_v36 = vpop.permute.xlu1 %531 }
 0xbaa   :  { %v534_v37 = vsel %vm123_vm2, %v532_v36, %v529_v35 }
 0xbab   :  { %1232 = vtanh.f32 %v534_v37 }
 0xbb8   :  { %v1233_v38 = vpop.eup %1232 }
 0xbb9   :  { %541 = vrot.lane.b32.xlu1 %v1233_v38, %s1274_s22  ;;  %537 = vrot.lane.b32.xlu0 %v1233_v38, %s1275_s4 }
 0xc2b   :  { %v542_v40 = vpop.permute.xlu1 %541  ;;  %v538_v41 = vpop.permute.xlu0 %537 }
 0xc2c   :  { %v544_v42 = vmul.f32 %v542_v40, %v518_v27  ;;  %v540_v43 = vmul.f32 %v538_v41, %v505_v25 }
 0xc2e   :  { %v1024_v44 = vrot.slane %v544_v42, 4  ;;  %550 = vrot.lane.b32.xlu1 %v544_v42, %s1274_s22  ;;  %546 = vrot.lane.b32.xlu0 %v540_v43, %s1272_s19 }
 0xc30   :  { %v1038_v46 = vsel %vm1037_vm5, %v1036_v45, %v1024_v44 }
 0xca0   :  { %v551_v48 = vpop.permute.xlu1 %550  ;;  %v547_v49 = vpop.permute.xlu0 %546 }
 0xca1   :  { %v553_v50 = vsel %vm123_vm2, %v547_v49, %v551_v48 }
 0xca2   :  { %v554_v51 = vpack.c.bf16 %v553_v50, %v553_v50 }
 0xca4   :  { %1162 = vmatmul.mubr.msk.bf16.vlgmr.msra.gmra.mxu1 %vm166_vm3, %v554_v51 }
 0xca5   :  { %768 = vmatpush1.bf16.msra.mxu1 %v1351_v3  ;;  %791 = vmatprep.mubr.bf16.mxu1 %v1273_v4 }
 0xca6   :  { %769 = vmatprep.subr.bf16.mxu1 %v1357_v5 }
 0xca9   :  { %770 = vmatpush1.bf16.msra.mxu1 %v1366_v7 }
 0xcaa   :  { %771 = vmatprep.subr.bf16.mxu1 %v1376_v9 }
 0xcad   :  { %772 = vmatpush1.bf16.msra.mxu1 %v1383_v10 }
 0xcae   :  { %773 = vmatprep.subr.bf16.mxu1 %v1392_v12 }
 0xcb1   :  { %774 = vmatpush1.bf16.msra.mxu1 %v1402_v13 }
 0xcb2   :  { %969 = vmatprep.subr.bf16.mxu1 %v1346_v2 }
 0xd64   :  { %v592_v23 = vpop.f32.mrf.mxu1 }
 0xd65   :  { %v599_v52 = vadd.f32 %v592_v23, %v1430_v22 }
 0xd66   :  { %v594_v53 = vpop.f32.mrf.mxu1 }
 0xd67   :  { %1234 = vtanh.f32 %v599_v52  ;;  %v600_v54 = vadd.f32 %v1454_v47, %v594_v53 }
 0xd68   :  { %v596_v55 = vpop.f32.mrf.mxu1 }
 0xd69   :  { %1236 = vtanh.f32 %v600_v54 }
 0xd6a   :  { %v597_v56 = vpop.f32.mrf.mxu1 }
 0xd74   :  { %v1235_v57 = vpop.eup %1234 }
 0xd75   :  { %607 = vrot.lane.b32.xlu0 %v1235_v57, %s1274_s22  ;;  %v603_v59 = vmul.f32 0.5, %v1235_v57 }
 0xd76   :  { %v1237_v58 = vpop.eup %1236 }
 0xd77   :  { %620 = vrot.lane.b32.xlu1 %v1237_v58, %s1274_s22  ;;  %v616_v60 = vmul.f32 0.5, %v1237_v58  ;;  %v604_v61 = vadd.f32 0.5, %v603_v59 }
 0xd79   :  { %v617_v63 = vadd.f32 0.5, %v616_v60  ;;  %v605_v8 = vmul.f32 %v604_v61, %v516_v32 }
 0xd7b   :  { %v618_v16 = vmul.f32 %v617_v63, %v529_v35 }
 0xde7   :  { %v608_v2 = vpop.permute.xlu0 %607 }
 0xde8   :  { %v610_v62 = vmul.f32 %v608_v2, %v604_v61 }
 0xde9   :  { %v621_v0 = vpop.permute.xlu1 %620 }
 0xdea   :  { %v623_v6 = vmul.f32 %v621_v0, %v617_v63  ;;  %612 = vrot.lane.b32.xlu0 %v610_v62, %s1272_s19 }
 0xdec   :  { %625 = vrot.lane.b32.xlu1 %v623_v6, %s1272_s19 }
 0xe5c   :  { %v613_v11 = vpop.permute.xlu0 %612 }
 0xe5d   :  { %v615_v14 = vadd.f32 %v613_v11, %v605_v8  ;;  %v800_v8 = vrot.slane %v1430_v22, 4 }
 0xe5e   :  { %v626_v15 = vpop.permute.xlu1 %625 }
 0xe5f   :  { %630 = vrot.lane.b32.xlu0 %v615_v14, %s1275_s4  ;;  %v628_v17 = vadd.f32 %v626_v15, %v618_v16 }
 0xed1   :  { %v631_v18 = vpop.permute.xlu0 %630 }
 0xed2   :  { %v633_v19 = vsel %vm123_vm2, %v631_v18, %v628_v17 }
 0xed3   :  { %1238 = vtanh.f32 %v633_v19 }
 0xee0   :  { %v1239_v20 = vpop.eup %1238 }
 0xee1   :  { %640 = vrot.lane.b32.xlu0 %v1239_v20, %s1274_s22  ;;  %636 = vrot.lane.b32.xlu1 %v1239_v20, %s1275_s4 }
 0xf53   :  { %v641_v21 = vpop.permute.xlu0 %640  ;;  %v637_v25 = vpop.permute.xlu1 %636 }
 0xf54   :  { %v643_v26 = vmul.f32 %v641_v21, %v617_v63  ;;  %v639_v24 = vmul.f32 %v637_v25, %v604_v61 }
 0xf56   :  { %v1026_v27 = vrot.slane %v643_v26, 2  ;;  %649 = vrot.lane.b32.xlu0 %v643_v26, %s1274_s22  ;;  %645 = vrot.lane.b32.xlu1 %v639_v24, %s1272_s19 }
 0xf58   :  { %v1551_v28 = vsel %vm1039_vm6, %v1038_v46, %v1026_v27 }
 0xfc8   :  { %v650_v29 = vpop.permute.xlu0 %649  ;;  %v646_v30 = vpop.permute.xlu1 %645 }
 0xfc9   :  { %v652_v31 = vsel %vm123_vm2, %v646_v30, %v650_v29 }
 0xfca   :  { %v653_v32 = vpack.c.bf16 %v652_v31, %v652_v31 }
 0xfcc   :  { %1163 = vmatmul.mubr.msk.bf16.vlgmr.msra.gmra.mxu0 %vm166_vm3, %v653_v32 }
 0xfcd   :  { %869 = vmatpush1.bf16.msra.mxu0 %v1351_v3  ;;  %892 = vmatprep.mubr.bf16.mxu0 %v1273_v4 }
 0xfce   :  { %870 = vmatprep.subr.bf16.mxu0 %v1357_v5 }
 0xfd1   :  { %871 = vmatpush1.bf16.msra.mxu0 %v1366_v7 }
 0xfd2   :  { %872 = vmatprep.subr.bf16.mxu0 %v1376_v9 }
 0xfd5   :  { %873 = vmatpush1.bf16.msra.mxu0 %v1383_v10 }
 0xfd6   :  { %874 = vmatprep.subr.bf16.mxu0 %v1392_v12 }
 0xfd9   :  { %875 = vmatpush1.bf16.msra.mxu0 %v1402_v13 }
 0xfda   :  { %1182 = vmatprep.subr.bf16.mxu0 %v1270_v1 }
0x108c   :  { %v691_v34 = vpop.f32.mrf.mxu0 }
0x108d   :  { %v701_v35 = vadd.f32 %v699_v33, %v691_v34 }
0x108e   :  { %v693_v36 = vpop.f32.mrf.mxu0 }
0x108f   :  { %1240 = vtanh.f32 %v701_v35  ;;  %v702_v37 = vadd.f32 %v1454_v47, %v693_v36 }
0x1090   :  { %v695_v38 = vpop.f32.mrf.mxu0 }
0x1091   :  { %1242 = vtanh.f32 %v702_v37 }
0x1092   :  { %v696_v39 = vpop.f32.mrf.mxu0 }
0x109c   :  { %v1241_v40 = vpop.eup %1240 }
0x109d   :  { %709 = vrot.lane.b32.xlu1 %v1241_v40, %s1274_s22  ;;  %v705_v42 = vmul.f32 0.5, %v1241_v40 }
0x109e   :  { %v1243_v41 = vpop.eup %1242 }
0x109f   :  { %722 = vrot.lane.b32.xlu0 %v1243_v41, %s1274_s22  ;;  %v718_v43 = vmul.f32 0.5, %v1243_v41  ;;  %v706_v44 = vadd.f32 0.5, %v705_v42  ;;  %v901_v41 = vrot.slane %v1430_v22, 6 }
0x10a1   :  { %v719_v48 = vadd.f32 0.5, %v718_v43  ;;  %v707_v51 = vmul.f32 %v706_v44, %v615_v14 }
0x10a3   :  { %v720_v54 = vmul.f32 %v719_v48, %v628_v17 }
0x110f   :  { %v710_v45 = vpop.permute.xlu1 %709 }
0x1110   :  { %v712_v46 = vmul.f32 %v710_v45, %v706_v44 }
0x1111   :  { %v723_v49 = vpop.permute.xlu0 %722 }
0x1112   :  { %v725_v50 = vmul.f32 %v723_v49, %v719_v48  ;;  %714 = vrot.lane.b32.xlu1 %v712_v46, %s1272_s19 }
0x1114   :  { %727 = vrot.lane.b32.xlu0 %v725_v50, %s1272_s19 }
0x1184   :  { %v715_v23 = vpop.permute.xlu1 %714 }
0x1185   :  { %v717_v52 = vadd.f32 %v715_v23, %v707_v51 }
0x1186   :  { %v728_v53 = vpop.permute.xlu0 %727 }
0x1187   :  { %732 = vrot.lane.b32.xlu1 %v717_v52, %s1275_s4  ;;  %v730_v55 = vadd.f32 %v728_v53, %v720_v54 }
0x11f9   :  { %v733_v56 = vpop.permute.xlu1 %732 }
0x11fa   :  { %v735_v57 = vsel %vm123_vm2, %v733_v56, %v730_v55 }
0x11fb   :  { %1244 = vtanh.f32 %v735_v57 }
0x1208   :  { %v1245_v58 = vpop.eup %1244 }
0x1209   :  { %742 = vrot.lane.b32.xlu1 %v1245_v58, %s1274_s22  ;;  %738 = vrot.lane.b32.xlu0 %v1245_v58, %s1275_s4 }
0x127b   :  { %v743_v59 = vpop.permute.xlu1 %742  ;;  %v739_v60 = vpop.permute.xlu0 %738 }
0x127c   :  { %v1574_v61 = vmul.f32 %v743_v59, %v719_v48  ;;  %v741_v2 = vmul.f32 %v739_v60, %v706_v44 }
0x127e   :  { %751 = vrot.lane.b32.xlu1 %v1574_v61, %s1274_s22  ;;  %747 = vrot.lane.b32.xlu0 %v741_v2, %s1272_s19 }
0x12f0   :  { %v752_v62 = vpop.permute.xlu1 %751  ;;  %v748_v63 = vpop.permute.xlu0 %747 }
0x12f1   :  { %v754_v0 = vsel %vm123_vm2, %v748_v63, %v752_v62 }
0x12f2   :  { %v755_v6 = vpack.c.bf16 %v754_v0, %v754_v0 }
0x12f4   :  { %1164 = vmatmul.mubr.msk.bf16.vlgmr.msra.gmra.mxu1 %vm166_vm3, %v755_v6 }
0x12f5   :  { %970 = vmatpush1.bf16.msra.mxu1 %v1351_v3  ;;  %993 = vmatprep.mubr.bf16.mxu1 %v1273_v4 }
0x12f6   :  { %971 = vmatprep.subr.bf16.mxu1 %v1357_v5 }
0x12f9   :  { %972 = vmatpush1.bf16.msra.mxu1 %v1366_v7 }
0x12fa   :  { %973 = vmatprep.subr.bf16.mxu1 %v1376_v9 }
0x12fd   :  { %974 = vmatpush1.bf16.msra.mxu1 %v1383_v10 }
0x12fe   :  { %975 = vmatprep.subr.bf16.mxu1 %v1392_v12 }
0x1301   :  { %976 = vmatpush1.bf16.msra.mxu1 %v1402_v13 }
0x13b4   :  { %v793_v11 = vpop.f32.mrf.mxu1 }
0x13b5   :  { %v802_v14 = vadd.f32 %v800_v8, %v793_v11 }
0x13b6   :  { %v795_v15 = vpop.f32.mrf.mxu1 }
0x13b7   :  { %1246 = vtanh.f32 %v802_v14  ;;  %v803_v3 = vadd.f32 %v1454_v47, %v795_v15 }
0x13b8   :  { %v797_v4 = vpop.f32.mrf.mxu1 }
0x13b9   :  { %1248 = vtanh.f32 %v803_v3 }
0x13ba   :  { %v798_v5 = vpop.f32.mrf.mxu1 }
0x13c4   :  { %v1247_v7 = vpop.eup %1246 }
0x13c5   :  { %810 = vrot.lane.b32.xlu0 %v1247_v7, %s1274_s22  ;;  %v806_v10 = vmul.f32 0.5, %v1247_v7 }
0x13c6   :  { %v1249_v9 = vpop.eup %1248 }
0x13c7   :  { %823 = vrot.lane.b32.xlu1 %v1249_v9, %s1274_s22  ;;  %v819_v12 = vmul.f32 0.5, %v1249_v9  ;;  %v807_v13 = vadd.f32 0.5, %v806_v10 }
0x13c9   :  { %v820_v18 = vadd.f32 0.5, %v819_v12  ;;  %v808_v21 = vmul.f32 %v807_v13, %v717_v52 }
0x13cb   :  { %v821_v27 = vmul.f32 %v820_v18, %v730_v55 }
0x1437   :  { %v811_v16 = vpop.permute.xlu0 %810 }
0x1438   :  { %v813_v17 = vmul.f32 %v811_v16, %v807_v13 }
0x1439   :  { %v824_v19 = vpop.permute.xlu1 %823 }
0x143a   :  { %v826_v20 = vmul.f32 %v824_v19, %v820_v18  ;;  %815 = vrot.lane.b32.xlu0 %v813_v17, %s1272_s19 }
0x143c   :  { %828 = vrot.lane.b32.xlu1 %v826_v20, %s1272_s19 }
0x14ac   :  { %v816_v25 = vpop.permute.xlu0 %815 }
0x14ad   :  { %v818_v26 = vadd.f32 %v816_v25, %v808_v21 }
0x14ae   :  { %v829_v24 = vpop.permute.xlu1 %828 }
0x14af   :  { %833 = vrot.lane.b32.xlu0 %v818_v26, %s1275_s4  ;;  %v831_v29 = vadd.f32 %v829_v24, %v821_v27 }
0x1521   :  { %v834_v30 = vpop.permute.xlu0 %833 }
0x1522   :  { %v836_v31 = vsel %vm123_vm2, %v834_v30, %v831_v29 }
0x1523   :  { %1250 = vtanh.f32 %v836_v31  ;;  %v1211_v31 = vld [vmem:[%s1661_s9] sm:$0xff]  }
0x1530   :  { %v1251_v32 = vpop.eup %1250 }
0x1531   :  { %843 = vrot.lane.b32.xlu0 %v1251_v32, %s1274_s22  ;;  %839 = vrot.lane.b32.xlu1 %v1251_v32, %s1275_s4 }
0x15a3   :  { %v844_v33 = vpop.permute.xlu0 %843  ;;  %v840_v34 = vpop.permute.xlu1 %839 }
0x15a4   :  { %v846_v35 = vmul.f32 %v844_v33, %v820_v18  ;;  %v842_v36 = vmul.f32 %v840_v34, %v807_v13 }
0x15a6   :  { %852 = vrot.lane.b32.xlu0 %v846_v35, %s1274_s22  ;;  %848 = vrot.lane.b32.xlu1 %v842_v36, %s1272_s19  ;;  %v1028_v8 = vrot.slane %v846_v35, 6 }
0x15a8   :  { %v1041_v5 = vsel %vm1035_vm4, %v1574_v61, %v1028_v8 }
0x1618   :  { %v853_v37 = vpop.permute.xlu0 %852  ;;  %v849_v38 = vpop.permute.xlu1 %848 }
0x1619   :  { %v855_v39 = vsel %vm123_vm2, %v849_v38, %v853_v37 }
0x161a   :  { %v856_v40 = vpack.c.bf16 %v855_v39, %v855_v39 }
0x161c   :  { %1165 = vmatmul.mubr.msk.bf16.vlgmr.msra.gmra.mxu0 %vm166_vm3, %v856_v40 }
0x161d   :  { %1186 = vmatprep.mubr.msk.bf16.mxu0 %vm1271_vm0, %v1270_v1 }
0x16dc   :  { %v894_v42 = vpop.f32.mrf.mxu0 }
0x16dd   :  { %v903_v43 = vadd.f32 %v901_v41, %v894_v42 }
0x16de   :  { %v896_v44 = vpop.f32.mrf.mxu0 }
0x16df   :  { %1252 = vtanh.f32 %v903_v43  ;;  %v904_v45 = vadd.f32 %v1454_v47, %v896_v44 }
0x16e0   :  { %v898_v46 = vpop.f32.mrf.mxu0 }
0x16e1   :  { %1254 = vtanh.f32 %v904_v45 }
0x16e2   :  { %v899_v48 = vpop.f32.mrf.mxu0 }
0x16ec   :  { %v1253_v49 = vpop.eup %1252 }
0x16ed   :  { %911 = vrot.lane.b32.xlu1 %v1253_v49, %s1274_s22  ;;  %v907_v51 = vmul.f32 0.5, %v1253_v49 }
0x16ee   :  { %v1255_v50 = vpop.eup %1254 }
0x16ef   :  { %924 = vrot.lane.b32.xlu0 %v1255_v50, %s1274_s22  ;;  %v920_v23 = vmul.f32 0.5, %v1255_v50  ;;  %v908_v52 = vadd.f32 0.5, %v907_v51 }
0x16f1   :  { %v921_v54 = vadd.f32 0.5, %v920_v23  ;;  %v909_v57 = vmul.f32 %v908_v52, %v818_v26 }
0x16f3   :  { %v922_v2 = vmul.f32 %v921_v54, %v831_v29 }
0x175f   :  { %v912_v53 = vpop.permute.xlu1 %911 }
0x1760   :  { %v914_v22 = vmul.f32 %v912_v53, %v908_v52 }
0x1761   :  { %v925_v55 = vpop.permute.xlu0 %924 }
0x1762   :  { %v927_v56 = vmul.f32 %v925_v55, %v921_v54  ;;  %916 = vrot.lane.b32.xlu1 %v914_v22, %s1272_s19 }
0x1764   :  { %929 = vrot.lane.b32.xlu0 %v927_v56, %s1272_s19 }
0x17d4   :  { %v917_v58 = vpop.permute.xlu1 %916 }
0x17d5   :  { %v919_v59 = vadd.f32 %v917_v58, %v909_v57 }
0x17d6   :  { %v930_v60 = vpop.permute.xlu0 %929 }
0x17d7   :  { %934 = vrot.lane.b32.xlu1 %v919_v59, %s1275_s4  ;;  %v932_v62 = vadd.f32 %v930_v60, %v922_v2 }
0x1849   :  { %v935_v63 = vpop.permute.xlu1 %934 }
0x184a   :  { %v937_v0 = vsel %vm123_vm2, %v935_v63, %v932_v62 }
0x184b   :  { %1256 = vtanh.f32 %v937_v0 }
0x1858   :  { %v1257_v6 = vpop.eup %1256 }
0x1859   :  { %944 = vrot.lane.b32.xlu1 %v1257_v6, %s1274_s22  ;;  %940 = vrot.lane.b32.xlu0 %v1257_v6, %s1275_s4 }
0x18cb   :  { %v945_v11 = vpop.permute.xlu1 %944  ;;  %v941_v14 = vpop.permute.xlu0 %940 }
0x18cc   :  { %v947_v15 = vmul.f32 %v945_v11, %v921_v54  ;;  %v943_v3 = vmul.f32 %v941_v14, %v908_v52 }
0x18ce   :  { %v1030_v4 = vrot.slane %v947_v15, 4  ;;  %953 = vrot.lane.b32.xlu1 %v947_v15, %s1274_s22  ;;  %949 = vrot.lane.b32.xlu0 %v943_v3, %s1272_s19 }
0x18d0   :  { %v1042_v7 = vsel %vm1037_vm5, %v1041_v5, %v1030_v4 }
0x1940   :  { %v954_v9 = vpop.permute.xlu1 %953  ;;  %v950_v10 = vpop.permute.xlu0 %949 }
0x1941   :  { %v956_v12 = vsel %vm123_vm2, %v950_v10, %v954_v9 }
0x1942   :  { %v957_v13 = vpack.c.bf16 %v956_v12, %v956_v12 }
0x1944   :  { %1166 = vmatmul.mubr.msk.bf16.vlgmr.msra.gmra.mxu1 %vm166_vm3, %v957_v13 }
0x1a04   :  { %v995_v16 = vpop.f32.mrf.mxu1 }
0x1a06   :  { %v996_v17 = vpop.f32.mrf.mxu1 }
0x1a07   :  { %v1001_v18 = vadd.f32 %v1454_v47, %v996_v17  ;;  %v1210_v47 = vld [vmem:[%s1661_s9 + $0x8] sm:$0xff]  }
0x1a08   :  { %v998_v19 = vpop.f32.mrf.mxu1  ;;  %1183 = vmatpush3.bf16.msra.mxu0 %v1210_v47 }
0x1a09   :  { %1258 = vtanh.f32 %v1001_v18  ;;  %1184 = vmatprep.subr.bf16.mxu0 %v1270_v1  ;;  %v1167_v1 = vld [vmem:[%s1662_s10] ss:$0 sm:$0xff] }
0x1a0a   :  { %v999_v20 = vpop.f32.mrf.mxu1 }
0x1a0c   :  { %1185 = vmatpush3.bf16.msra.mxu0 %v1211_v31 }
0x1a16   :  { %v1259_v21 = vpop.eup %1258 }
0x1a17   :  { %1007 = vrot.lane.b32.xlu0 %v1259_v21, %s1274_s22  ;;  %v1003_v61 = vmul.f32 0.5, %v1259_v21 }
0x1a19   :  { %v1004_v25 = vadd.f32 0.5, %v1003_v61 }
0x1a1b   :  { %v1005_v27 = vmul.f32 %v1004_v25, %v932_v62 }
0x1a89   :  { %v1008_v26 = vpop.permute.xlu0 %1007 }
0x1a8a   :  { %v1010_v24 = vmul.f32 %v1008_v26, %v1004_v25 }
0x1a8c   :  { %1012 = vrot.lane.b32.xlu1 %v1010_v24, %s1272_s19 }
0x1afe   :  { %v1013_v29 = vpop.permute.xlu1 %1012 }
0x1aff   :  { %v1015_v30 = vadd.f32 %v1013_v29, %v1005_v27 }
0x1b01   :  { %1260 = vtanh.f32 %v1015_v30 }
0x1b0e   :  { %v1261_v32 = vpop.eup %1260 }
0x1b0f   :  { %1018 = vrot.lane.b32.xlu0 %v1261_v32, %s1274_s22 }
0x1b81   :  { %v1019_v33 = vpop.permute.xlu0 %1018 }
0x1b82   :  { %v1021_v34 = vmul.f32 %v1019_v33, %v1004_v25 }
0x1b84   :  { %v1033_v35 = vrot.slane %v1021_v34, 2 }
0x1b86   :  { %v1043_v36 = vsel %vm1039_vm6, %v1042_v7, %v1033_v35 }
0x1b87   :  { %v1044_v37 = vpack.c.bf16 %v1043_v36, %v1551_v28 }
0x1b89   :  { %1057 = vrot.lane.b32.xlu1 %v1044_v37, %s1272_s19 }
0x1bfb   :  { %v1058_v38 = vpop.permute.xlu1 %1057 }
0x1bfc   :  { %1187 = vmatmul.mubr.msk.bf16.vlgmr.msra.gmra.mxu0 %vm123_vm2, %v1058_v38 }
0x1cbc   :  { %v1108_v39 = vpop.f32.mrf.mxu0 }
0x1cbd   :  { %v1109_v40 = vadd.f32 %v1167_v1, %v1108_v39 }
0x1cbe   :  { %v1188_v41 = vpop.f32.mrf.mxu0 }
0x1cbf   :  { %v1115_v42 = vsel %vm123_vm2, %v1109_v40, -inf }
0x1cc0   :  { %1116 = vmax.xlane.f32.xlu0 %v1115_v42  ;;  %v1111_v43 = vpop.f32.mrf.mxu0 }
0x1cc1   :  { %v1112_v44 = vadd.f32 %v1167_v1, %v1111_v43 }
0x1cc2   :  { %v1189_v45 = vpop.f32.mrf.mxu0 }
0x1cc3   :  { %v1118_v28 = vsel %vm123_vm2, %v1112_v44, -inf }
0x1cc4   :  { %1119 = vmax.xlane.f32.xlu1 %v1118_v28 }
0x1d49   :  { %v1117_v46 = vpop.xlane.xlu0 %1116 }
0x1d4a   :  { %v1121_v48 = vsub.f32 %v1109_v40, %v1117_v46 }
0x1d4c   :  { %v1123_v49 = vmul.f32 1.442695, %v1121_v48 }
0x1d4d   :  { %v1120_v50 = vpop.xlane.xlu1 %1119 }
0x1d4e   :  { %1262 = vpow2.f32 %v1123_v49  ;;  %v1122_v51 = vsub.f32 %v1112_v44, %v1120_v50 }
0x1d50   :  { %v1125_v23 = vmul.f32 1.442695, %v1122_v51 }
0x1d52   :  { %1264 = vpow2.f32 %v1125_v23 }
0x1d5b   :  { %v1263_v52 = vpop.eup %1262 }
0x1d5c   :  { %v1127_v53 = vsel %vm123_vm2, %v1263_v52, 0.0 }
0x1d5d   :  { %1128 = vadd.xlane.f32.xlu0 %v1127_v53 }
0x1d5f   :  { %v1265_v22 = vpop.eup %1264 }
0x1d60   :  { %v1130_v54 = vsel %vm123_vm2, %v1265_v22, 0.0 }
0x1d61   :  { %1131 = vadd.xlane.f32.xlu0 %v1130_v54 }
0x1de6   :  { %v1129_v55 = vpop.xlane.xlu0 %1128 }
0x1de7   :  { %1266 = vlog2.f32 %v1129_v55 }
0x1dea   :  { %v1132_v56 = vpop.xlane.xlu0 %1131 }
0x1deb   :  { %1268 = vlog2.f32 %v1132_v56 }
0x1df4   :  { %v1267_v57 = vpop.eup %1266 }
0x1df5   :  { %v1134_v58 = vmul.f32 0.6931472, %v1267_v57 }
0x1df7   :  { %v1137_v59 = vsub.f32 %v1121_v48, %v1134_v58 }
0x1df8   :  { %v1269_v60 = vpop.eup %1268 }
0x1df9   :  { %1139 = vst.msk [vmem:[%s1663_s11] sm:$0xff] %vm123_vm2, %v1137_v59  ;;  %v1136_v2 = vmul.f32 0.6931472, %v1269_v60 }
0x1dfb   :  { %v1138_v62 = vsub.f32 %v1122_v51, %v1136_v2 }
0x1dfd   :  { %1140 = vst.msk [vmem:[%s1663_s11 + $0x8] sm:$0xff] %vm123_vm2, %v1138_v62 }

</bundles_post_ra>
